<compile_context>
chip_gen: v7x
topology: tpu7x:2x2x1
jax: 0.10.0
libtpu: 0.0.40
codegen_flags: <defaults>
</compile_context>

<pallas_src>
import math
import functools

import jax
import jax.numpy as jnp
import numpy as np
from jax import lax
from jax.experimental import pallas as pl
from jax.experimental.pallas import tpu as pltpu

CFG = dict(
    vocab_size=256,
    emb_dim=64,
    hidden_dim=128,
    n_heads=4,
    n_kv_groups=2,
    n_layers=2,
    context_length=16,
    rope_base=10000.0,
    rope_freq=None,          # freq_config=None path of compute_rope_params
    dtype=jnp.float32,
)
EPS = 1e-5
NEG_INF = -1e30


# ----------------------------------------------------------------------------
# RoPE tables (plain JAX glue; matches compute_rope_params with freq_config=None)
# ----------------------------------------------------------------------------
def compute_rope_params(head_dim, theta_base, context_length, dtype=jnp.float32):
    assert head_dim % 2 == 0
    inv_freq = 1.0 / theta_base ** (jnp.arange(0, head_dim, 2, dtype=dtype) / head_dim)
    positions = jnp.arange(context_length, dtype=dtype)
    angles = positions[:, None] * inv_freq[None, :]
    angles = jnp.concatenate([angles, angles], axis=1)
    return jnp.cos(angles), jnp.sin(angles)


def _rotate_half_matrix(width, head_dim):
    """Constant R (block-diag per head) such that x @ R == cat(-x2, x1) per head."""
    h2 = head_dim // 2
    R = np.zeros((width, width), np.float32)
    for start in range(0, width, head_dim):
        for j in range(h2):
            R[start + h2 + j, start + j] = -1.0   # rotated[:, j]    = -x[:, j + h2]
            R[start + j, start + h2 + j] = 1.0    # rotated[:, j+h2] =  x[:, j]
    return jnp.asarray(R)


# ----------------------------------------------------------------------------
# Fused Pallas kernel: all layers + final norm + LM head in one pallas_call
# ----------------------------------------------------------------------------
def llama_fused_kernel(
        # constant-index inputs (resident across layer steps)
        x_ref, cosq_ref, sinq_ref, cosk_ref, sink_ref, mask_ref,
        fnorm_ref, wout_ref,
        # per-layer stacked weights, indexed by the layer grid axis
        n1_ref, wq_ref, wqr_ref, wk_ref, wkr_ref, wv_ref, wo_ref,
        n2_ref, w1_ref, w2_ref, w3_ref,
        # output
        o_ref,
        # scratch: activations resident across layers
        x_vmem,
        *, num_heads, num_kv_groups, head_dim):
    layer = pl.program_id(0)
    gs = num_heads // num_kv_groups
    hd = head_dim
    BS = x_vmem.shape[0]

    @pl.when(layer == 0)
    def _():
        x_vmem[...] = x_ref[...].astype(jnp.float32)

    x = x_vmem[...]                                                   # (BS, E)

    # ---- RMSNorm 1 ----
    xn = x * lax.rsqrt(jnp.mean(x * x, axis=-1, keepdims=True) + EPS) * n1_ref[0]

    # ---- QKV projections; rotate-half folded into extra projections (MXU) ----
    q = jnp.dot(xn, wq_ref[0], preferred_element_type=jnp.float32)    # (BS, E)
    qr = jnp.dot(xn, wqr_ref[0], preferred_element_type=jnp.float32)  # rotate_half(q)
    k = jnp.dot(xn, wk_ref[0], preferred_element_type=jnp.float32)    # (BS, KW)
    kr = jnp.dot(xn, wkr_ref[0], preferred_element_type=jnp.float32)  # rotate_half(k)
    v = jnp.dot(xn, wv_ref[0], preferred_element_type=jnp.float32)    # (BS, KW)

    # RoPE once on the full-width tensors (1/sqrt(hd) pre-folded into q tables).
    q = q * cosq_ref[...] + qr * sinq_ref[...]
    k = k * cosk_ref[...] + kr * sink_ref[...]

    # ---- GQA causal attention, batched per KV group ----
    ctx_heads = []
    for g in range(num_kv_groups):
        kh = k[:, g * hd:(g + 1) * hd]                                # (BS, hd)
        vh = v[:, g * hd:(g + 1) * hd]                                # (BS, hd)
        # stack this group's query heads along sublanes -> one matmul per group
        qg = jnp.concatenate(
            [q[:, h * hd:(h + 1) * hd] for h in range(g * gs, (g + 1) * gs)],
            axis=0)                                                   # (gs*BS, hd)
        s = lax.dot_general(qg, kh, (((1,), (1,)), ((), ())),
                            preferred_element_type=jnp.float32)       # (gs*BS, BS)
        s = s + mask_ref[...]          # block-diag causal additive mask (precomputed)
        m = jnp.max(s, axis=-1, keepdims=True)
        p = jnp.exp(s - m)
        ctx_g = jnp.dot(p, vh, preferred_element_type=jnp.float32)    # (gs*BS, hd)
        ctx_g = ctx_g * pl.reciprocal(jnp.sum(p, axis=-1, keepdims=True), approx=True)
        for hl in range(gs):
            ctx_heads.append(ctx_g[hl * BS:(hl + 1) * BS, :])
    ctx = jnp.concatenate(ctx_heads, axis=1)                          # (BS, E)

    x = x + jnp.dot(ctx, wo_ref[0], preferred_element_type=jnp.float32)

    # ---- RMSNorm 2 + SwiGLU feed-forward ----
    xn2 = x * lax.rsqrt(jnp.mean(x * x, axis=-1, keepdims=True) + EPS) * n2_ref[0]
    h1 = jnp.dot(xn2, w1_ref[0], preferred_element_type=jnp.float32)
    h2 = jnp.dot(xn2, w2_ref[0], preferred_element_type=jnp.float32)
    silu = h1 * pl.reciprocal(1.0 + jnp.exp(-h1), approx=True)
    x = x + jnp.dot(silu * h2, w3_ref[0], preferred_element_type=jnp.float32)

    x_vmem[...] = x

    # ---- final RMSNorm + LM head fused into the last layer step ----
    @pl.when(layer == pl.num_programs(0) - 1)
    def _():
        xf = x * lax.rsqrt(jnp.mean(x * x, axis=-1, keepdims=True) + EPS) * fnorm_ref[...]
        o_ref[...] = jnp.dot(xf, wout_ref[...],
                             preferred_element_type=jnp.float32).astype(o_ref.dtype)


# ----------------------------------------------------------------------------
# One-time parameter packing (hoisted out of the forward pass)
# ----------------------------------------------------------------------------
def prepare_model(params, cfg, batch, seq):
    """Transpose weights to [in,out], stack over layers, fold RoPE rotation into
    extra projection weights, and build rope/mask tables for (batch, seq)."""
    E, nh, nkv = cfg['emb_dim'], cfg['n_heads'], cfg['n_kv_groups']
    hd = E // nh
    gs = nh // nkv
    KW = nkv * hd
    BS = batch * seq

    Rq = _rotate_half_matrix(E, hd)
    Rk = _rotate_half_matrix(KW, hd)

    def stack(fn):
        return jnp.stack([fn(b) for b in params['blocks']])

    wq_t = stack(lambda b: b['wq'].T)                    # (L, E, E)
    wk_t = stack(lambda b: b['wk'].T)                    # (L, E, KW)
    prep = dict(
        tok_emb=params['tok_emb'],
        n1=jnp.stack([b['n1'] for b in params['blocks']]),          # (L, 1, E)
        wq_t=wq_t,
        wqr_t=jnp.einsum('lij,jk->lik', wq_t, Rq),
        wk_t=wk_t,
        wkr_t=jnp.einsum('lij,jk->lik', wk_t, Rk),
        wv_t=stack(lambda b: b['wv'].T),
        wo_t=stack(lambda b: b['wo'].T),
        n2=jnp.stack([b['n2'] for b in params['blocks']]),
        w1_t=stack(lambda b: b['w1'].T),
        w2_t=stack(lambda b: b['w2'].T),
        w3_t=stack(lambda b: b['w3'].T),
        final_norm=params['final_norm'],
        out_head_t=params['out_head'].T,
    )

    # RoPE tables tiled per head across lanes and per batch row across sublanes.
    cos, sin = compute_rope_params(hd, cfg['rope_base'], cfg['context_length'])
    cos, sin = cos[:seq], sin[:seq]
    scale = 1.0 / math.sqrt(hd)
    prep['cos_q'] = jnp.tile(cos, (batch, nh)) * scale   # (BS, E)   scale folded in
    prep['sin_q'] = jnp.tile(sin, (batch, nh)) * scale
    prep['cos_k'] = jnp.tile(cos, (batch, nkv))          # (BS, KW)
    prep['sin_k'] = jnp.tile(sin, (batch, nkv))

    # Block-diagonal causal additive mask on flattened (BS, BS) scores,
    # tiled group_size times along M (group's query heads stacked on sublanes).
    rows = np.arange(BS)
    same_batch = (rows[:, None] // seq) == (rows[None, :] // seq)
    causal = (rows[None, :] % seq) <= (rows[:, None] % seq)
    base = np.where(same_batch & causal, 0.0, NEG_INF).astype(np.float32)
    prep['mask'] = jnp.asarray(np.tile(base, (gs, 1)))   # (gs*BS, BS)
    return prep


# ----------------------------------------------------------------------------
# Forward wrapper: one pallas_call for the whole model
# ----------------------------------------------------------------------------
def llama_forward(prep, input_ids, cfg):
    B, S = input_ids.shape
    assert S <= cfg['context_length']
    E, H, V = cfg['emb_dim'], cfg['hidden_dim'], cfg['vocab_size']
    nh, nkv, L = cfg['n_heads'], cfg['n_kv_groups'], cfg['n_layers']
    hd = E // nh
    KW = nkv * hd
    BS = B * S

    # token-embedding gather is glue (plain JAX)
    x = prep['tok_emb'][input_ids].reshape(BS, E)

    def const(shape):
        nd = len(shape)
        return pl.BlockSpec(shape, lambda l, _nd=nd: (0,) * _nd)

    def per_layer(shape):        # shape excludes the leading layer axis
        nd = len(shape)
        return pl.BlockSpec((1,) + tuple(shape),
                            lambda l, _nd=nd: (l,) + (0,) * _nd)

    kernel = functools.partial(llama_fused_kernel,
                               num_heads=nh, num_kv_groups=nkv, head_dim=hd)

    logits = pl.pallas_call(
        kernel,
        out_shape=jax.ShapeDtypeStruct((BS, V), cfg['dtype']),
        grid=(L,),
        in_specs=[
            const((BS, E)),                     # x (flattened activations)
            const((BS, E)), const((BS, E)),     # cos_q, sin_q
            const((BS, KW)), const((BS, KW)),   # cos_k, sin_k
            const(tuple(prep['mask'].shape)),   # additive causal mask
            const((1, E)),                      # final_norm
            const((E, V)),                      # out_head (pre-transposed)
            per_layer((1, E)),                  # n1
            per_layer((E, E)),                  # wq_t
            per_layer((E, E)),                  # wqr_t (rotate-half folded)
            per_layer((E, KW)),                 # wk_t
            per_layer((E, KW)),                 # wkr_t
            per_layer((E, KW)),                 # wv_t
            per_layer((E, E)),                  # wo_t
            per_layer((1, E)),                  # n2
            per_layer((E, H)),                  # w1_t
            per_layer((E, H)),                  # w2_t
            per_layer((H, E)),                  # w3_t
        ],
        out_specs=pl.BlockSpec((BS, V), lambda l: (0, 0)),
        scratch_shapes=[pltpu.VMEM((BS, E), jnp.float32)],
        compiler_params=pltpu.CompilerParams(
            dimension_semantics=("arbitrary",)),
    )(x,
      prep['cos_q'], prep['sin_q'], prep['cos_k'], prep['sin_k'], prep['mask'],
      prep['final_norm'], prep['out_head_t'],
      prep['n1'], prep['wq_t'], prep['wqr_t'], prep['wk_t'], prep['wkr_t'],
      prep['wv_t'], prep['wo_t'], prep['n2'], prep['w1_t'], prep['w2_t'],
      prep['w3_t'])

    return logits.reshape(B, S, V)
    # TODO(synk): cross-entropy loss (targets path) and generate() sampling
    # utilities are not kernelized (forward logits only).


# ----------------------------------------------------------------------------
# Deterministic parameter init (mirrors Llama32Model._init_weights, torch layout)
# ----------------------------------------------------------------------------
def init_params(key, cfg):
    E, H, V = cfg['emb_dim'], cfg['hidden_dim'], cfg['vocab_size']
    nh, nkv = cfg['n_heads'], cfg['n_kv_groups']
    hd = E // nh
    std = 0.02
    out_std = 0.02 * (2 * cfg['n_layers']) ** (-0.5)   # LLAMA_SCALE_INIT on out_proj

    keys = jax.random.split(key, 2 + 7 * cfg['n_layers'])
    params = {
        'tok_emb': (jax.random.normal(keys[0], (V, E)) * std).astype(cfg['dtype']),
        'out_head': (jax.random.normal(keys[1], (V, E)) * std).astype(cfg['dtype']),
        'final_norm': jnp.ones((1, E), cfg['dtype']),
        'blocks': [],
    }
    ki = 2
    for _ in range(cfg['n_layers']):
        blk = dict(
            wq=(jax.random.normal(keys[ki + 0], (E, E)) * std).astype(cfg['dtype']),
            wk=(jax.random.normal(keys[ki + 1], (nkv * hd, E)) * std).astype(cfg['dtype']),
            wv=(jax.random.normal(keys[ki + 2], (nkv * hd, E)) * std).astype(cfg['dtype']),
            wo=(jax.random.normal(keys[ki + 3], (E, E)) * out_std).astype(cfg['dtype']),
            w1=(jax.random.normal(keys[ki + 4], (H, E)) * std).astype(cfg['dtype']),
            w2=(jax.random.normal(keys[ki + 5], (H, E)) * std).astype(cfg['dtype']),
            w3=(jax.random.normal(keys[ki + 6], (E, H)) * std).astype(cfg['dtype']),
            n1=jnp.ones((1, E), cfg['dtype']),
            n2=jnp.ones((1, E), cfg['dtype']),
        )
        params['blocks'].append(blk)
        ki += 7
    return params


# ----------------------------------------------------------------------------
# Pure-JAX reference (mirrors the PyTorch forward) for correctness checking
# ----------------------------------------------------------------------------
def _ref_rope(x, cos, sin):     # x: (B, H, S, hd)
    hd = x.shape[-1]
    x1, x2 = x[..., : hd // 2], x[..., hd // 2:]
    rotated = jnp.concatenate([-x2, x1], axis=-1)
    return x * cos[None, None] + rotated * sin[None, None]


def _ref_rms(x, w):
    return x * lax.rsqrt(jnp.mean(x * x, axis=-1, keepdims=True) + EPS) * w[0]


def ref_forward(params, input_ids, cfg):
    B, S = input_ids.shape
    E = cfg['emb_dim']
    nh, nkv = cfg['n_heads'], cfg['n_kv_groups']
    hd = E // nh
    gs = nh // nkv
    cos, sin = compute_rope_params(hd, cfg['rope_base'], cfg['context_length'])
    cos, sin = cos[:S], sin[:S]

    x = params['tok_emb'][input_ids]
    for blk in params['blocks']:
        xn = _ref_rms(x, blk['n1'])
        q = (xn @ blk['wq'].T).reshape(B, S, nh, hd).transpose(0, 2, 1, 3)
        k = (xn @ blk['wk'].T).reshape(B, S, nkv, hd).transpose(0, 2, 1, 3)
        v = (xn @ blk['wv'].T).reshape(B, S, nkv, hd).transpose(0, 2, 1, 3)
        q, k = _ref_rope(q, cos, sin), _ref_rope(k, cos, sin)
        k, v = jnp.repeat(k, gs, axis=1), jnp.repeat(v, gs, axis=1)
        s = jnp.einsum('bhqd,bhkd->bhqk', q, k) / math.sqrt(hd)
        mask = jnp.tril(jnp.ones((S, S), bool))
        s = jnp.where(mask, s, -jnp.inf)
        p = jax.nn.softmax(s, axis=-1)
        ctx = jnp.einsum('bhqk,bhkd->bhqd', p, v).transpose(0, 2, 1, 3).reshape(B, S, E)
        x = x + ctx @ blk['wo'].T
        xn2 = _ref_rms(x, blk['n2'])
        h1, h2 = xn2 @ blk['w1'].T, xn2 @ blk['w2'].T
        x = x + (jax.nn.silu(h1) * h2) @ blk['w3'].T
    x = _ref_rms(x, params['final_norm'])
    return x @ params['out_head'].T


# ----------------------------------------------------------------------------
if __name__ == "__main__":
    key = jax.random.PRNGKey(0)
    pkey, dkey = jax.random.split(key)
    params = init_params(pkey, CFG)

    B, S = 2, 8
    input_ids = jax.random.randint(dkey, (B, S), 0, CFG['vocab_size'], dtype=jnp.int32)

    prep = prepare_model(params, CFG, B, S)     # one-time: transpose/stack/fold
    logits = llama_forward(prep, input_ids, CFG)
    logits = jax.block_until_ready(logits)
    assert logits.shape == (B, S, CFG['vocab_size'])
    assert logits.dtype == CFG['dtype']

    ref = ref_forward(params, input_ids, CFG)
    np.testing.assert_allclose(np.asarray(logits), np.asarray(ref), rtol=2e-2, atol=2e-2)

    print("KERNEL_OK")
</pallas_src>

<mosaic_0001>
module attributes {stable_mosaic.version = 11 : i64} {
  func.func @llama_fused_kernel(%arg0: i32, %arg1: memref<16x64xf32, #tpu.memory_space<vmem>>, %arg2: memref<16x64xf32, #tpu.memory_space<vmem>>, %arg3: memref<16x64xf32, #tpu.memory_space<vmem>>, %arg4: memref<16x32xf32, #tpu.memory_space<vmem>>, %arg5: memref<16x32xf32, #tpu.memory_space<vmem>>, %arg6: memref<32x16xf32, #tpu.memory_space<vmem>>, %arg7: memref<1x64xf32, #tpu.memory_space<vmem>>, %arg8: memref<64x256xf32, #tpu.memory_space<vmem>>, %arg9: memref<1x1x64xf32, #tpu.memory_space<vmem>>, %arg10: memref<1x64x64xf32, #tpu.memory_space<vmem>>, %arg11: memref<1x64x64xf32, #tpu.memory_space<vmem>>, %arg12: memref<1x64x32xf32, #tpu.memory_space<vmem>>, %arg13: memref<1x64x32xf32, #tpu.memory_space<vmem>>, %arg14: memref<1x64x32xf32, #tpu.memory_space<vmem>>, %arg15: memref<1x64x64xf32, #tpu.memory_space<vmem>>, %arg16: memref<1x1x64xf32, #tpu.memory_space<vmem>>, %arg17: memref<1x64x128xf32, #tpu.memory_space<vmem>>, %arg18: memref<1x64x128xf32, #tpu.memory_space<vmem>>, %arg19: memref<1x128x64xf32, #tpu.memory_space<vmem>>, %arg20: memref<16x256xf32, #tpu.memory_space<vmem>>, %arg21: memref<16x64xf32, #tpu.memory_space<vmem>>) attributes {dimension_semantics = [#tpu.dimension_semantics<arbitrary>], iteration_bounds = array<i64: 2>, scalar_prefetch = 0 : i64, scratch_operands = 1 : i64, tpu.core_type = #tpu.core_type<tc>, window_params = [{pipeline_mode = #tpu.pipeline_mode<synchronous>, transform_indices = @transform_0, window_bounds = array<i64: 16, 64>}, {pipeline_mode = #tpu.pipeline_mode<synchronous>, transform_indices = @transform_1, window_bounds = array<i64: 16, 64>}, {pipeline_mode = #tpu.pipeline_mode<synchronous>, transform_indices = @transform_2, window_bounds = array<i64: 16, 64>}, {pipeline_mode = #tpu.pipeline_mode<synchronous>, transform_indices = @transform_3, window_bounds = array<i64: 16, 32>}, {pipeline_mode = #tpu.pipeline_mode<synchronous>, transform_indices = @transform_4, window_bounds = array<i64: 16, 32>}, {pipeline_mode = #tpu.pipeline_mode<synchronous>, transform_indices = @transform_5, window_bounds = array<i64: 32, 16>}, {pipeline_mode = #tpu.pipeline_mode<synchronous>, transform_indices = @transform_6, window_bounds = array<i64: 1, 64>}, {pipeline_mode = #tpu.pipeline_mode<synchronous>, transform_indices = @transform_7, window_bounds = array<i64: 64, 256>}, {transform_indices = @transform_8, window_bounds = array<i64: 1, 1, 64>}, {transform_indices = @transform_9, window_bounds = array<i64: 1, 64, 64>}, {transform_indices = @transform_10, window_bounds = array<i64: 1, 64, 64>}, {transform_indices = @transform_11, window_bounds = array<i64: 1, 64, 32>}, {transform_indices = @transform_12, window_bounds = array<i64: 1, 64, 32>}, {transform_indices = @transform_13, window_bounds = array<i64: 1, 64, 32>}, {transform_indices = @transform_14, window_bounds = array<i64: 1, 64, 64>}, {transform_indices = @transform_15, window_bounds = array<i64: 1, 1, 64>}, {transform_indices = @transform_16, window_bounds = array<i64: 1, 64, 128>}, {transform_indices = @transform_17, window_bounds = array<i64: 1, 64, 128>}, {transform_indices = @transform_18, window_bounds = array<i64: 1, 128, 64>}, {pipeline_mode = #tpu.pipeline_mode<synchronous>, transform_indices = @transform_19, window_bounds = array<i64: 16, 256>}]} {
    %c0_i32 = arith.constant 0 : i32
    %0 = arith.cmpi eq, %arg0, %c0_i32 : i32
    %1 = arith.extui %0 : i1 to i32
    %c0_i32_0 = arith.constant 0 : i32
    %2 = arith.cmpi ne, %1, %c0_i32_0 : i32
    scf.if %2 {
      %c0_74 = arith.constant 0 : index
      %c0_75 = arith.constant 0 : index
      %126 = vector.load %arg1[%c0_74, %c0_75] : memref<16x64xf32, #tpu.memory_space<vmem>>, vector<16x64xf32>
      %c0_76 = arith.constant 0 : index
      %c0_77 = arith.constant 0 : index
      %127 = vector.load %arg21[%c0_76, %c0_77] : memref<16x64xf32, #tpu.memory_space<vmem>>, vector<16x64xf32>
      tpu.vector_store %arg21[%c0_76, %c0_77], %126 {strides = array<i32>} : memref<16x64xf32, #tpu.memory_space<vmem>>, vector<16x64xf32>,
    } else {
    }
    %c0 = arith.constant 0 : index
    %c0_1 = arith.constant 0 : index
    %3 = vector.load %arg21[%c0, %c0_1] : memref<16x64xf32, #tpu.memory_space<vmem>>, vector<16x64xf32>
    %4 = arith.mulf %3, %3 : vector<16x64xf32>
    %cst = arith.constant dense<0.000000e+00> : vector<16xf32>
    %5 = vector.multi_reduction <add>, %4, %cst [1] : vector<16x64xf32> to vector<16xf32>
    %6 = vector.shape_cast %5 : vector<16xf32> to vector<16x1xf32>
    %cst_2 = arith.constant 6.400000e+01 : f32
    %7 = vector.broadcast %cst_2 : f32 to vector<16x1xf32>
    %8 = arith.divf %6, %7 : vector<16x1xf32>
    %cst_3 = arith.constant 9.99999974E-6 : f32
    %9 = vector.broadcast %cst_3 : f32 to vector<16x1xf32>
    %10 = arith.addf %8, %9 : vector<16x1xf32>
    %11 = math.rsqrt %10 : vector<16x1xf32>
    %12 = vector.broadcast %11 : vector<16x1xf32> to vector<16x64xf32>
    %13 = arith.mulf %3, %12 : vector<16x64xf32>
    %c0_4 = arith.constant 0 : index
    %c0_5 = arith.constant 0 : index
    %c0_6 = arith.constant 0 : index
    %14 = vector.load %arg9[%c0_4, %c0_5, %c0_6] : memref<1x1x64xf32, #tpu.memory_space<vmem>>, vector<1x1x64xf32>
    %15 = vector.shape_cast %14 : vector<1x1x64xf32> to vector<1x64xf32>
    %16 = vector.broadcast %15 : vector<1x64xf32> to vector<16x64xf32>
    %17 = arith.mulf %13, %16 : vector<16x64xf32>
    %c0_7 = arith.constant 0 : index
    %c0_8 = arith.constant 0 : index
    %c0_9 = arith.constant 0 : index
    %18 = vector.load %arg10[%c0_7, %c0_8, %c0_9] : memref<1x64x64xf32, #tpu.memory_space<vmem>>, vector<1x64x64xf32>
    %19 = vector.shape_cast %18 : vector<1x64x64xf32> to vector<64x64xf32>
    %cst_10 = arith.constant dense<0.000000e+00> : vector<16x64xf32>
    %20 = tpu.matmul %17, %19, %cst_10 {dimension_numbers = #tpu.dot_dimension_numbers<[1], [0], [0], [1], [0, 0, 1, 1], [], []>} : vector<16x64xf32>, vector<64x64xf32>, vector<16x64xf32> -> vector<16x64xf32>
    %c0_11 = arith.constant 0 : index
    %c0_12 = arith.constant 0 : index
    %c0_13 = arith.constant 0 : index
    %21 = vector.load %arg11[%c0_11, %c0_12, %c0_13] : memref<1x64x64xf32, #tpu.memory_space<vmem>>, vector<1x64x64xf32>
    %22 = vector.shape_cast %21 : vector<1x64x64xf32> to vector<64x64xf32>
    %cst_14 = arith.constant dense<0.000000e+00> : vector<16x64xf32>
    %23 = tpu.matmul %17, %22, %cst_14 {dimension_numbers = #tpu.dot_dimension_numbers<[1], [0], [0], [1], [0, 0, 1, 1], [], []>} : vector<16x64xf32>, vector<64x64xf32>, vector<16x64xf32> -> vector<16x64xf32>
    %c0_15 = arith.constant 0 : index
    %c0_16 = arith.constant 0 : index
    %c0_17 = arith.constant 0 : index
    %24 = vector.load %arg12[%c0_15, %c0_16, %c0_17] : memref<1x64x32xf32, #tpu.memory_space<vmem>>, vector<1x64x32xf32>
    %25 = vector.shape_cast %24 : vector<1x64x32xf32> to vector<64x32xf32>
    %cst_18 = arith.constant dense<0.000000e+00> : vector<16x32xf32>
    %26 = tpu.matmul %17, %25, %cst_18 {dimension_numbers = #tpu.dot_dimension_numbers<[1], [0], [0], [1], [0, 0, 1, 1], [], []>} : vector<16x64xf32>, vector<64x32xf32>, vector<16x32xf32> -> vector<16x32xf32>
    %c0_19 = arith.constant 0 : index
    %c0_20 = arith.constant 0 : index
    %c0_21 = arith.constant 0 : index
    %27 = vector.load %arg13[%c0_19, %c0_20, %c0_21] : memref<1x64x32xf32, #tpu.memory_space<vmem>>, vector<1x64x32xf32>
    %28 = vector.shape_cast %27 : vector<1x64x32xf32> to vector<64x32xf32>
    %cst_22 = arith.constant dense<0.000000e+00> : vector<16x32xf32>
    %29 = tpu.matmul %17, %28, %cst_22 {dimension_numbers = #tpu.dot_dimension_numbers<[1], [0], [0], [1], [0, 0, 1, 1], [], []>} : vector<16x64xf32>, vector<64x32xf32>, vector<16x32xf32> -> vector<16x32xf32>
    %c0_23 = arith.constant 0 : index
    %c0_24 = arith.constant 0 : index
    %c0_25 = arith.constant 0 : index
    %30 = vector.load %arg14[%c0_23, %c0_24, %c0_25] : memref<1x64x32xf32, #tpu.memory_space<vmem>>, vector<1x64x32xf32>
    %31 = vector.shape_cast %30 : vector<1x64x32xf32> to vector<64x32xf32>
    %cst_26 = arith.constant dense<0.000000e+00> : vector<16x32xf32>
    %32 = tpu.matmul %17, %31, %cst_26 {dimension_numbers = #tpu.dot_dimension_numbers<[1], [0], [0], [1], [0, 0, 1, 1], [], []>} : vector<16x64xf32>, vector<64x32xf32>, vector<16x32xf32> -> vector<16x32xf32>
    %c0_27 = arith.constant 0 : index
    %c0_28 = arith.constant 0 : index
    %33 = vector.load %arg2[%c0_27, %c0_28] : memref<16x64xf32, #tpu.memory_space<vmem>>, vector<16x64xf32>
    %34 = arith.mulf %20, %33 : vector<16x64xf32>
    %c0_29 = arith.constant 0 : index
    %c0_30 = arith.constant 0 : index
    %35 = vector.load %arg3[%c0_29, %c0_30] : memref<16x64xf32, #tpu.memory_space<vmem>>, vector<16x64xf32>
    %36 = arith.mulf %23, %35 : vector<16x64xf32>
    %37 = arith.addf %34, %36 : vector<16x64xf32>
    %c0_31 = arith.constant 0 : index
    %c0_32 = arith.constant 0 : index
    %38 = vector.load %arg4[%c0_31, %c0_32] : memref<16x32xf32, #tpu.memory_space<vmem>>, vector<16x32xf32>
    %39 = arith.mulf %26, %38 : vector<16x32xf32>
    %c0_33 = arith.constant 0 : index
    %c0_34 = arith.constant 0 : index
    %40 = vector.load %arg5[%c0_33, %c0_34] : memref<16x32xf32, #tpu.memory_space<vmem>>, vector<16x32xf32>
    %41 = arith.mulf %29, %40 : vector<16x32xf32>
    %42 = arith.addf %39, %41 : vector<16x32xf32>
    %43 = vector.extract_strided_slice %42 {offsets = [0, 0], sizes = [16, 16], strides = [1, 1]} : vector<16x32xf32> to vector<16x16xf32>
    %44 = vector.extract_strided_slice %32 {offsets = [0, 0], sizes = [16, 16], strides = [1, 1]} : vector<16x32xf32> to vector<16x16xf32>
    %45 = vector.extract_strided_slice %37 {offsets = [0, 0], sizes = [16, 16], strides = [1, 1]} : vector<16x64xf32> to vector<16x16xf32>
    %46 = vector.extract_strided_slice %37 {offsets = [0, 16], sizes = [16, 16], strides = [1, 1]} : vector<16x64xf32> to vector<16x16xf32>
    %47 = tpu.concatenate %45, %46 in 0 : vector<16x16xf32>, vector<16x16xf32> -> vector<32x16xf32>
    %cst_35 = arith.constant dense<0.000000e+00> : vector<32x16xf32>
    %48 = tpu.matmul %47, %43, %cst_35 {dimension_numbers = #tpu.dot_dimension_numbers<[1], [1], [0], [0], [0, 0, 1, 0], [], []>} : vector<32x16xf32>, vector<16x16xf32>, vector<32x16xf32> -> vector<32x16xf32>
    %c0_36 = arith.constant 0 : index
    %c0_37 = arith.constant 0 : index
    %49 = vector.load %arg6[%c0_36, %c0_37] : memref<32x16xf32, #tpu.memory_space<vmem>>, vector<32x16xf32>
    %50 = arith.addf %48, %49 : vector<32x16xf32>
    %cst_38 = arith.constant dense<0xFF800000> : vector<32xf32>
    %51 = vector.multi_reduction <maximumf>, %50, %cst_38 [1] : vector<32x16xf32> to vector<32xf32>
    %52 = vector.shape_cast %51 : vector<32xf32> to vector<32x1xf32>
    %53 = vector.broadcast %52 : vector<32x1xf32> to vector<32x16xf32>
    %54 = arith.subf %50, %53 : vector<32x16xf32>
    %55 = math.exp %54 : vector<32x16xf32>
    %cst_39 = arith.constant dense<0.000000e+00> : vector<32x16xf32>
    %56 = tpu.matmul %55, %44, %cst_39 {dimension_numbers = #tpu.dot_dimension_numbers<[1], [0], [0], [1], [0, 0, 1, 1], [], []>} : vector<32x16xf32>, vector<16x16xf32>, vector<32x16xf32> -> vector<32x16xf32>
    %cst_40 = arith.constant dense<0.000000e+00> : vector<32xf32>
    %57 = vector.multi_reduction <add>, %55, %cst_40 [1] : vector<32x16xf32> to vector<32xf32>
    %58 = vector.shape_cast %57 : vector<32xf32> to vector<32x1xf32>
    %59 = tpu.reciprocal %58 {approx = true} : vector<32x1xf32> -> vector<32x1xf32>
    %60 = vector.broadcast %59 : vector<32x1xf32> to vector<32x16xf32>
    %61 = arith.mulf %56, %60 : vector<32x16xf32>
    %62 = vector.extract_strided_slice %61 {offsets = [0, 0], sizes = [16, 16], strides = [1, 1]} : vector<32x16xf32> to vector<16x16xf32>
    %63 = vector.extract_strided_slice %61 {offsets = [16, 0], sizes = [16, 16], strides = [1, 1]} : vector<32x16xf32> to vector<16x16xf32>
    %64 = vector.extract_strided_slice %42 {offsets = [0, 16], sizes = [16, 16], strides = [1, 1]} : vector<16x32xf32> to vector<16x16xf32>
    %65 = vector.extract_strided_slice %32 {offsets = [0, 16], sizes = [16, 16], strides = [1, 1]} : vector<16x32xf32> to vector<16x16xf32>
    %66 = vector.extract_strided_slice %37 {offsets = [0, 32], sizes = [16, 16], strides = [1, 1]} : vector<16x64xf32> to vector<16x16xf32>
    %67 = vector.extract_strided_slice %37 {offsets = [0, 48], sizes = [16, 16], strides = [1, 1]} : vector<16x64xf32> to vector<16x16xf32>
    %68 = tpu.concatenate %66, %67 in 0 : vector<16x16xf32>, vector<16x16xf32> -> vector<32x16xf32>
    %cst_41 = arith.constant dense<0.000000e+00> : vector<32x16xf32>
    %69 = tpu.matmul %68, %64, %cst_41 {dimension_numbers = #tpu.dot_dimension_numbers<[1], [1], [0], [0], [0, 0, 1, 0], [], []>} : vector<32x16xf32>, vector<16x16xf32>, vector<32x16xf32> -> vector<32x16xf32>
    %c0_42 = arith.constant 0 : index
    %c0_43 = arith.constant 0 : index
    %70 = vector.load %arg6[%c0_42, %c0_43] : memref<32x16xf32, #tpu.memory_space<vmem>>, vector<32x16xf32>
    %71 = arith.addf %69, %70 : vector<32x16xf32>
    %cst_44 = arith.constant dense<0xFF800000> : vector<32xf32>
    %72 = vector.multi_reduction <maximumf>, %71, %cst_44 [1] : vector<32x16xf32> to vector<32xf32>
    %73 = vector.shape_cast %72 : vector<32xf32> to vector<32x1xf32>
    %74 = vector.broadcast %73 : vector<32x1xf32> to vector<32x16xf32>
    %75 = arith.subf %71, %74 : vector<32x16xf32>
    %76 = math.exp %75 : vector<32x16xf32>
    %cst_45 = arith.constant dense<0.000000e+00> : vector<32x16xf32>
    %77 = tpu.matmul %76, %65, %cst_45 {dimension_numbers = #tpu.dot_dimension_numbers<[1], [0], [0], [1], [0, 0, 1, 1], [], []>} : vector<32x16xf32>, vector<16x16xf32>, vector<32x16xf32> -> vector<32x16xf32>
    %cst_46 = arith.constant dense<0.000000e+00> : vector<32xf32>
    %78 = vector.multi_reduction <add>, %76, %cst_46 [1] : vector<32x16xf32> to vector<32xf32>
    %79 = vector.shape_cast %78 : vector<32xf32> to vector<32x1xf32>
    %80 = tpu.reciprocal %79 {approx = true} : vector<32x1xf32> -> vector<32x1xf32>
    %81 = vector.broadcast %80 : vector<32x1xf32> to vector<32x16xf32>
    %82 = arith.mulf %77, %81 : vector<32x16xf32>
    %83 = vector.extract_strided_slice %82 {offsets = [0, 0], sizes = [16, 16], strides = [1, 1]} : vector<32x16xf32> to vector<16x16xf32>
    %84 = vector.extract_strided_slice %82 {offsets = [16, 0], sizes = [16, 16], strides = [1, 1]} : vector<32x16xf32> to vector<16x16xf32>
    %85 = tpu.concatenate %62, %63, %83, %84 in 1 : vector<16x16xf32>, vector<16x16xf32>, vector<16x16xf32>, vector<16x16xf32> -> vector<16x64xf32>
    %c0_47 = arith.constant 0 : index
    %c0_48 = arith.constant 0 : index
    %c0_49 = arith.constant 0 : index
    %86 = vector.load %arg15[%c0_47, %c0_48, %c0_49] : memref<1x64x64xf32, #tpu.memory_space<vmem>>, vector<1x64x64xf32>
    %87 = vector.shape_cast %86 : vector<1x64x64xf32> to vector<64x64xf32>
    %cst_50 = arith.constant dense<0.000000e+00> : vector<16x64xf32>
    %88 = tpu.matmul %85, %87, %cst_50 {dimension_numbers = #tpu.dot_dimension_numbers<[1], [0], [0], [1], [0, 0, 1, 1], [], []>} : vector<16x64xf32>, vector<64x64xf32>, vector<16x64xf32> -> vector<16x64xf32>
    %89 = arith.addf %3, %88 : vector<16x64xf32>
    %90 = arith.mulf %89, %89 : vector<16x64xf32>
    %cst_51 = arith.constant dense<0.000000e+00> : vector<16xf32>
    %91 = vector.multi_reduction <add>, %90, %cst_51 [1] : vector<16x64xf32> to vector<16xf32>
    %92 = vector.shape_cast %91 : vector<16xf32> to vector<16x1xf32>
    %cst_52 = arith.constant 6.400000e+01 : f32
    %93 = vector.broadcast %cst_52 : f32 to vector<16x1xf32>
    %94 = arith.divf %92, %93 : vector<16x1xf32>
    %cst_53 = arith.constant 9.99999974E-6 : f32
    %95 = vector.broadcast %cst_53 : f32 to vector<16x1xf32>
    %96 = arith.addf %94, %95 : vector<16x1xf32>
    %97 = math.rsqrt %96 : vector<16x1xf32>
    %98 = vector.broadcast %97 : vector<16x1xf32> to vector<16x64xf32>
    %99 = arith.mulf %89, %98 : vector<16x64xf32>
    %c0_54 = arith.constant 0 : index
    %c0_55 = arith.constant 0 : index
    %c0_56 = arith.constant 0 : index
    %100 = vector.load %arg16[%c0_54, %c0_55, %c0_56] : memref<1x1x64xf32, #tpu.memory_space<vmem>>, vector<1x1x64xf32>
    %101 = vector.shape_cast %100 : vector<1x1x64xf32> to vector<1x64xf32>
    %102 = vector.broadcast %101 : vector<1x64xf32> to vector<16x64xf32>
    %103 = arith.mulf %99, %102 : vector<16x64xf32>
    %c0_57 = arith.constant 0 : index
    %c0_58 = arith.constant 0 : index
    %c0_59 = arith.constant 0 : index
    %104 = vector.load %arg17[%c0_57, %c0_58, %c0_59] : memref<1x64x128xf32, #tpu.memory_space<vmem>>, vector<1x64x128xf32>
    %105 = vector.shape_cast %104 : vector<1x64x128xf32> to vector<64x128xf32>
    %cst_60 = arith.constant dense<0.000000e+00> : vector<16x128xf32>
    %106 = tpu.matmul %103, %105, %cst_60 {dimension_numbers = #tpu.dot_dimension_numbers<[1], [0], [0], [1], [0, 0, 1, 1], [], []>} : vector<16x64xf32>, vector<64x128xf32>, vector<16x128xf32> -> vector<16x128xf32>
    %c0_61 = arith.constant 0 : index
    %c0_62 = arith.constant 0 : index
    %c0_63 = arith.constant 0 : index
    %107 = vector.load %arg18[%c0_61, %c0_62, %c0_63] : memref<1x64x128xf32, #tpu.memory_space<vmem>>, vector<1x64x128xf32>
    %108 = vector.shape_cast %107 : vector<1x64x128xf32> to vector<64x128xf32>
    %cst_64 = arith.constant dense<0.000000e+00> : vector<16x128xf32>
    %109 = tpu.matmul %103, %108, %cst_64 {dimension_numbers = #tpu.dot_dimension_numbers<[1], [0], [0], [1], [0, 0, 1, 1], [], []>} : vector<16x64xf32>, vector<64x128xf32>, vector<16x128xf32> -> vector<16x128xf32>
    %cst_65 = arith.constant 0.000000e+00 : f32
    %110 = vector.broadcast %cst_65 : f32 to vector<16x128xf32>
    %111 = arith.subf %110, %106 : vector<16x128xf32>
    %112 = math.exp %111 : vector<16x128xf32>
    %cst_66 = arith.constant 1.000000e+00 : f32
    %113 = vector.broadcast %cst_66 : f32 to vector<16x128xf32>
    %114 = arith.addf %113, %112 : vector<16x128xf32>
    %115 = tpu.reciprocal %114 {approx = true} : vector<16x128xf32> -> vector<16x128xf32>
    %116 = arith.mulf %106, %115 : vector<16x128xf32>
    %117 = arith.mulf %116, %109 : vector<16x128xf32>
    %c0_67 = arith.constant 0 : index
    %c0_68 = arith.constant 0 : index
    %c0_69 = arith.constant 0 : index
    %118 = vector.load %arg19[%c0_67, %c0_68, %c0_69] : memref<1x128x64xf32, #tpu.memory_space<vmem>>, vector<1x128x64xf32>
    %119 = vector.shape_cast %118 : vector<1x128x64xf32> to vector<128x64xf32>
    %cst_70 = arith.constant dense<0.000000e+00> : vector<16x64xf32>
    %120 = tpu.matmul %117, %119, %cst_70 {dimension_numbers = #tpu.dot_dimension_numbers<[1], [0], [0], [1], [0, 0, 1, 1], [], []>} : vector<16x128xf32>, vector<128x64xf32>, vector<16x64xf32> -> vector<16x64xf32>
    %121 = arith.addf %89, %120 : vector<16x64xf32>
    %c0_71 = arith.constant 0 : index
    %c0_72 = arith.constant 0 : index
    %122 = vector.load %arg21[%c0_71, %c0_72] : memref<16x64xf32, #tpu.memory_space<vmem>>, vector<16x64xf32>
    tpu.vector_store %arg21[%c0_71, %c0_72], %121 {strides = array<i32>} : memref<16x64xf32, #tpu.memory_space<vmem>>, vector<16x64xf32>,
    %c1_i32 = arith.constant 1 : i32
    %123 = arith.cmpi eq, %arg0, %c1_i32 : i32
    %124 = arith.extui %123 : i1 to i32
    %c0_i32_73 = arith.constant 0 : i32
    %125 = arith.cmpi ne, %124, %c0_i32_73 : i32
    scf.if %125 {
      %126 = arith.mulf %121, %121 : vector<16x64xf32>
      %cst_74 = arith.constant dense<0.000000e+00> : vector<16xf32>
      %127 = vector.multi_reduction <add>, %126, %cst_74 [1] : vector<16x64xf32> to vector<16xf32>
      %128 = vector.shape_cast %127 : vector<16xf32> to vector<16x1xf32>
      %cst_75 = arith.constant 6.400000e+01 : f32
      %129 = vector.broadcast %cst_75 : f32 to vector<16x1xf32>
      %130 = arith.divf %128, %129 : vector<16x1xf32>
      %cst_76 = arith.constant 9.99999974E-6 : f32
      %131 = vector.broadcast %cst_76 : f32 to vector<16x1xf32>
      %132 = arith.addf %130, %131 : vector<16x1xf32>
      %133 = math.rsqrt %132 : vector<16x1xf32>
      %134 = vector.broadcast %133 : vector<16x1xf32> to vector<16x64xf32>
      %135 = arith.mulf %121, %134 : vector<16x64xf32>
      %c0_77 = arith.constant 0 : index
      %c0_78 = arith.constant 0 : index
      %136 = vector.load %arg7[%c0_77, %c0_78] : memref<1x64xf32, #tpu.memory_space<vmem>>, vector<1x64xf32>
      %137 = vector.broadcast %136 : vector<1x64xf32> to vector<16x64xf32>
      %138 = arith.mulf %135, %137 : vector<16x64xf32>
      %c0_79 = arith.constant 0 : index
      %c0_80 = arith.constant 0 : index
      %139 = vector.load %arg8[%c0_79, %c0_80] : memref<64x256xf32, #tpu.memory_space<vmem>>, vector<64x256xf32>
      %cst_81 = arith.constant dense<0.000000e+00> : vector<16x256xf32>
      %140 = tpu.matmul %138, %139, %cst_81 {dimension_numbers = #tpu.dot_dimension_numbers<[1], [0], [0], [1], [0, 0, 1, 1], [], []>} : vector<16x64xf32>, vector<64x256xf32>, vector<16x256xf32> -> vector<16x256xf32>
      %c0_82 = arith.constant 0 : index
      %c0_83 = arith.constant 0 : index
      %141 = vector.load %arg20[%c0_82, %c0_83] : memref<16x256xf32, #tpu.memory_space<vmem>>, vector<16x256xf32>
      tpu.vector_store %arg20[%c0_82, %c0_83], %140 {strides = array<i32>} : memref<16x256xf32, #tpu.memory_space<vmem>>, vector<16x256xf32>,
    } else {
    }
    return
  }
  func.func @transform_0(%arg0: i32) -> (i32, i32) {
    %c0_i32 = arith.constant 0 : i32
    %c0_i32_0 = arith.constant 0 : i32
    %c0_i32_1 = arith.constant 0 : i32
    return %c0_i32, %c0_i32_0 : i32, i32
  }
  func.func @transform_1(%arg0: i32) -> (i32, i32) {
    %c0_i32 = arith.constant 0 : i32
    %c0_i32_0 = arith.constant 0 : i32
    %c0_i32_1 = arith.constant 0 : i32
    return %c0_i32, %c0_i32_0 : i32, i32
  }
  func.func @transform_2(%arg0: i32) -> (i32, i32) {
    %c0_i32 = arith.constant 0 : i32
    %c0_i32_0 = arith.constant 0 : i32
    %c0_i32_1 = arith.constant 0 : i32
    return %c0_i32, %c0_i32_0 : i32, i32
  }
  func.func @transform_3(%arg0: i32) -> (i32, i32) {
    %c0_i32 = arith.constant 0 : i32
    %c0_i32_0 = arith.constant 0 : i32
    %c0_i32_1 = arith.constant 0 : i32
    return %c0_i32, %c0_i32_0 : i32, i32
  }
  func.func @transform_4(%arg0: i32) -> (i32, i32) {
    %c0_i32 = arith.constant 0 : i32
    %c0_i32_0 = arith.constant 0 : i32
    %c0_i32_1 = arith.constant 0 : i32
    return %c0_i32, %c0_i32_0 : i32, i32
  }
  func.func @transform_5(%arg0: i32) -> (i32, i32) {
    %c0_i32 = arith.constant 0 : i32
    %c0_i32_0 = arith.constant 0 : i32
    %c0_i32_1 = arith.constant 0 : i32
    return %c0_i32, %c0_i32_0 : i32, i32
  }
  func.func @transform_6(%arg0: i32) -> (i32, i32) {
    %c0_i32 = arith.constant 0 : i32
    %c0_i32_0 = arith.constant 0 : i32
    %c0_i32_1 = arith.constant 0 : i32
    return %c0_i32, %c0_i32_0 : i32, i32
  }
  func.func @transform_7(%arg0: i32) -> (i32, i32) {
    %c0_i32 = arith.constant 0 : i32
    %c0_i32_0 = arith.constant 0 : i32
    %c0_i32_1 = arith.constant 0 : i32
    return %c0_i32, %c0_i32_0 : i32, i32
  }
  func.func @transform_8(%arg0: i32) -> (i32, i32, i32) {
    %c0_i32 = arith.constant 0 : i32
    %c0_i32_0 = arith.constant 0 : i32
    %c0_i32_1 = arith.constant 0 : i32
    return %arg0, %c0_i32, %c0_i32_0 : i32, i32, i32
  }
  func.func @transform_9(%arg0: i32) -> (i32, i32, i32) {
    %c0_i32 = arith.constant 0 : i32
    %c0_i32_0 = arith.constant 0 : i32
    %c0_i32_1 = arith.constant 0 : i32
    return %arg0, %c0_i32, %c0_i32_0 : i32, i32, i32
  }
  func.func @transform_10(%arg0: i32) -> (i32, i32, i32) {
    %c0_i32 = arith.constant 0 : i32
    %c0_i32_0 = arith.constant 0 : i32
    %c0_i32_1 = arith.constant 0 : i32
    return %arg0, %c0_i32, %c0_i32_0 : i32, i32, i32
  }
  func.func @transform_11(%arg0: i32) -> (i32, i32, i32) {
    %c0_i32 = arith.constant 0 : i32
    %c0_i32_0 = arith.constant 0 : i32
    %c0_i32_1 = arith.constant 0 : i32
    return %arg0, %c0_i32, %c0_i32_0 : i32, i32, i32
  }
  func.func @transform_12(%arg0: i32) -> (i32, i32, i32) {
    %c0_i32 = arith.constant 0 : i32
    %c0_i32_0 = arith.constant 0 : i32
    %c0_i32_1 = arith.constant 0 : i32
    return %arg0, %c0_i32, %c0_i32_0 : i32, i32, i32
  }
  func.func @transform_13(%arg0: i32) -> (i32, i32, i32) {
    %c0_i32 = arith.constant 0 : i32
    %c0_i32_0 = arith.constant 0 : i32
    %c0_i32_1 = arith.constant 0 : i32
    return %arg0, %c0_i32, %c0_i32_0 : i32, i32, i32
  }
  func.func @transform_14(%arg0: i32) -> (i32, i32, i32) {
    %c0_i32 = arith.constant 0 : i32
    %c0_i32_0 = arith.constant 0 : i32
    %c0_i32_1 = arith.constant 0 : i32
    return %arg0, %c0_i32, %c0_i32_0 : i32, i32, i32
  }
  func.func @transform_15(%arg0: i32) -> (i32, i32, i32) {
    %c0_i32 = arith.constant 0 : i32
    %c0_i32_0 = arith.constant 0 : i32
    %c0_i32_1 = arith.constant 0 : i32
    return %arg0, %c0_i32, %c0_i32_0 : i32, i32, i32
  }
  func.func @transform_16(%arg0: i32) -> (i32, i32, i32) {
    %c0_i32 = arith.constant 0 : i32
    %c0_i32_0 = arith.constant 0 : i32
    %c0_i32_1 = arith.constant 0 : i32
    return %arg0, %c0_i32, %c0_i32_0 : i32, i32, i32
  }
  func.func @transform_17(%arg0: i32) -> (i32, i32, i32) {
    %c0_i32 = arith.constant 0 : i32
    %c0_i32_0 = arith.constant 0 : i32
    %c0_i32_1 = arith.constant 0 : i32
    return %arg0, %c0_i32, %c0_i32_0 : i32, i32, i32
  }
  func.func @transform_18(%arg0: i32) -> (i32, i32, i32) {
    %c0_i32 = arith.constant 0 : i32
    %c0_i32_0 = arith.constant 0 : i32
    %c0_i32_1 = arith.constant 0 : i32
    return %arg0, %c0_i32, %c0_i32_0 : i32, i32, i32
  }
  func.func @transform_19(%arg0: i32) -> (i32, i32) {
    %c0_i32 = arith.constant 0 : i32
    %c0_i32_0 = arith.constant 0 : i32
    %c0_i32_1 = arith.constant 0 : i32
    return %c0_i32, %c0_i32_0 : i32, i32
  }
}

</mosaic_0001>

<bundles_post_ra>
// kernel: tpu_custom_call.1
= control target key start
LH: loop header
LB: loop body
LE: loop exit
PB: predicated region body
PF: predicated region fallthrough
CT: control target
= control target key end

     0   :  { %s4175_s0 = inlined_call_operand.vmem [shape: f32[16,64], index: 0, kind: input, shape index: {}]   ;;  %s4176_s1 = inlined_call_operand.hbm [shape: f32[16,64], index: 1, kind: input, shape index: {}]   ;;  %s4177_s2 = inlined_call_operand.hbm [shape: f32[16,64], index: 2, kind: input, shape index: {}]   ;;  %s4178_s3 = inlined_call_operand.hbm [shape: f32[16,32], index: 3, kind: input, shape index: {}]   ;;  %s4179_s4 = inlined_call_operand.hbm [shape: f32[16,32], index: 4, kind: input, shape index: {}]   ;;  %s4180_s5 = inlined_call_operand.vmem [shape: f32[32,16], index: 5, kind: input, shape index: {}]   ;;  %s4181_s6 = inlined_call_operand.vmem [shape: f32[1,64], index: 6, kind: input, shape index: {}]   ;;  %s4182_s7 = inlined_call_operand.vmem [shape: f32[64,256], index: 7, kind: input, shape index: {}]   ;;  %s4183_s8 = inlined_call_operand.vmem [shape: f32[2,1,64], index: 8, kind: input, shape index: {}]   ;;  %s4184_s9 = inlined_call_operand.vmem [shape: f32[2,64,64], index: 9, kind: input, shape index: {}]   ;;  %s4185_s10 = inlined_call_operand.vmem [shape: f32[2,64,64], index: 10, kind: input, shape index: {}]   ;;  %s4186_s11 = inlined_call_operand.vmem [shape: f32[2,64,32], index: 11, kind: input, shape index: {}]   ;;  %s4187_s12 = inlined_call_operand.vmem [shape: f32[2,64,32], index: 12, kind: input, shape index: {}]   ;;  %s4188_s13 = inlined_call_operand.vmem [shape: f32[2,64,32], index: 13, kind: input, shape index: {}]   ;;  %s4189_s14 = inlined_call_operand.vmem [shape: f32[2,64,64], index: 14, kind: input, shape index: {}]   ;;  %s4190_s15 = inlined_call_operand.vmem [shape: f32[2,1,64], index: 15, kind: input, shape index: {}]   ;;  %s4191_s16 = inlined_call_operand.vmem [shape: f32[2,64,128], index: 16, kind: input, shape index: {}]   ;;  %s4192_s17 = inlined_call_operand.vmem [shape: f32[2,64,128], index: 17, kind: input, shape index: {}]   ;;  %s4193_s18 = inlined_call_operand.vmem [shape: f32[2,128,64], index: 18, kind: input, shape index: {}]   ;;  %s4194_s19 = inlined_call_operand.hbm [shape: f32[16,256], index: 19, kind: output, shape index: {}]  }
   0x1   :  { %4206 = sst [smem:[#allocation17_spill]] %s4175_s0 }
   0x2   :  { %4207 = sst [smem:[#allocation18_spill]] %s4176_s1 }
   0x3   :  { %4208 = sst [smem:[#allocation19_spill]] %s4177_s2 }
   0x4   :  { %4209 = sst [smem:[#allocation20_spill]] %s4178_s3 }
   0x5   :  { %4210 = sst [smem:[#allocation21_spill]] %s4179_s4 }
   0x6   :  { %4211 = sst [smem:[#allocation22_spill]] %s4180_s5 }
   0x7   :  { %4212 = sst [smem:[#allocation23_spill]] %s4181_s6 }
   0x8   :  { %4213 = sst [smem:[#allocation24_spill]] %s4182_s7 }
   0x9   :  { %4214 = sst [smem:[#allocation25_spill]] %s4184_s9 }
   0xa   :  { %4215 = sst [smem:[#allocation26_spill]] %s4185_s10 }
   0xb   :  { %4216 = sst [smem:[#allocation27_spill]] %s4186_s11 }
   0xc   :  { %4217 = sst [smem:[#allocation28_spill]] %s4187_s12 }
   0xd   :  { %4218 = sst [smem:[#allocation29_spill]] %s4192_s17 }
   0xe   :  { %4219 = sst [smem:[#allocation30_spill]] %s4193_s18 }
   0xf   :  { %4220 = sst [smem:[#allocation31_spill]] %s4194_s19 }
  0x10   :  { %24 = vsyncpa [#allocation4], 0 }
  0x11   :  { %25 = vsyncpa [#allocation7], 0 }
  0x12   :  { %26 = vsyncpa [#allocation10], 0 }
  0x13   :  { %27 = vsyncpa [#allocation5], 0  ;;  %s3630_s0 = smov 0  }
  0x14 LB: > { %4221 = sst [smem:[#allocation16_spill]] %s3514_s0  ;;  %s3636_s30 = sadd.s32 4294967295, %s3514_s0   ;;  %s3514_s0 = sphi %s3630_s0, %s33_s0  }
  0x15   : > { %p2589_p0 = scmp.ge.s32.totalorder %s3514_s0, 1  ;;  %p513_p1 = scmp.lt.s32.totalorder %s3514_s0, 3 }
  0x16   : > { %p4203_p3 = scmp.eq.s32.totalorder %s3636_s30, 0  ;;  %s3516_s21 = smov [#allocation6]  }
  0x17   : > { %p3642_p4 = pnand %p2589_p0, %p513_p1  ;;  %s541_s1 = sshll.u32 %s3516_s21, 4  ;;  %s3646_s1 = int_to_ptr.vmem [resolvable:$true] %s541_s1 }
  0x18   : > { %s3517_s22 = smov [#allocation3]   ;;  %s3518_s24 = smov [#allocation8]  }
  0x19   : > { %s4222_s20 = scalar_select %p3642_p4, 1, 0 }
  0x1a   : > { %p3247_p5 = pneg %p3642_p4  ;;  %s528_s2 = sshll.u32 %s3517_s22, 4  ;;  %s3650_s2 = int_to_ptr.vmem [resolvable:$true] %s528_s2 }
  0x1b   : > { %s554_s25 = sshll.u32 %s3518_s24, 4  ;;  %s3519_s3 = smov [#allocation9]   ;;  %s3658_s25 = int_to_ptr.vmem [resolvable:$true] %s554_s25 }
  0x1c   : > { %p3654_p6 = pnand %p4203_p3, %p3247_p5  ;;  %s3660_s26 = sshll.u32 %s3519_s3, 4  ;;  %s568_s26 = int_to_ptr.vmem [resolvable:$true] %s3660_s26 }
  0x1d   : > { %s4224_s29 = sld [smem:[#allocation19_spill]] }
  0x1e   : > { %p3670_p8 = pneg %p3654_p6 }
  0x23   : > { %s3354_s21 = scalar_lea.hbm %s4224_s29, 256 }
  0x24   : > { %p3355_p7 = scmp.ne.s32.totalorder %s4224_s29, %s3354_s21  ;;  %p3361_p11 = scmp.lt.u32.totalorder %s3354_s21, %s4224_s29 }
  0x26   : > { %p3357_p9 = pnand %p3670_p8, %p3355_p7 }
  0x28   : > { %p3358_p10 = pneg %p3357_p9 }
  0x2a   : > { %p3363_p12 = pnand %p3361_p11, %p3358_p10 }
  0x2c   : > { %3366 = shalt.err (!%p3363_p12)
}
  0x2d   : > { %s3367_s0 = scalar_lea.vmem %s3646_s1, 256  ;;  %p3375_p5 = scmp.lt.s32.totalorder %s3646_s1, %s3646_s1 }
  0x2e   : > { %p3368_p13 = scmp.ne.s32.totalorder %s3646_s1, %s3367_s0  ;;  %p3376_p2 = scmp.lt.s32.totalorder %s3367_s0, %s3367_s0 }
  0x30   : > { %p3370_p0 = pnand %p3368_p13, %p3670_p8  ;;  %p3377_p7 = por %p3376_p2, %p3375_p5 }
  0x32   : > { %p3371_p1 = pneg %p3370_p0 }
  0x34   : > { %p3378_p9 = pnand %p3377_p7, %p3371_p1 }
  0x36   : > { %3381 = shalt.err (!%p3378_p9)
}
  0x37   : > { %s3520_s27 = smov 128   ;;  %s3521_s28 = smov 8  }
  0x38   : > { %3253 = dma.hbm_to_vmem [thread:$0]  (!%p3654_p6), %s4224_s29, 256, %s3646_s1, [#allocation7], %s3520_s27, %s3520_s27, %s3521_s28  }
  0x39   : > { %s4226_s6 = sld [smem:[#allocation18_spill]] }
  0x3f   : > { %s3382_s0 = scalar_lea.hbm %s4226_s6, 256 }
  0x40   : > { %p3383_p2 = scmp.ne.s32.totalorder %s4226_s6, %s3382_s0  ;;  %p3389_p12 = scmp.lt.u32.totalorder %s3382_s0, %s4226_s6 }
  0x42   : > { %p3385_p10 = pnand %p3383_p2, %p3670_p8 }
  0x44   : > { %p3386_p11 = pneg %p3385_p10 }
  0x46   : > { %p3391_p13 = pnand %p3389_p12, %p3386_p11 }
  0x48   : > { %3394 = shalt.err (!%p3391_p13)
}
  0x49   : > { %s3395_s1 = scalar_lea.vmem %s3650_s2, 256  ;;  %p3403_p7 = scmp.lt.s32.totalorder %s3650_s2, %s3650_s2 }
  0x4a   : > { %p3396_p0 = scmp.ne.s32.totalorder %s3650_s2, %s3395_s1  ;;  %p3404_p9 = scmp.lt.s32.totalorder %s3395_s1, %s3395_s1 }
  0x4c   : > { %p3398_p1 = pnand %p3396_p0, %p3670_p8  ;;  %p3405_p2 = por %p3404_p9, %p3403_p7 }
  0x4e   : > { %p3399_p5 = pneg %p3398_p1 }
  0x50   : > { %p3406_p10 = pnand %p3405_p2, %p3399_p5 }
  0x52   : > { %3409 = shalt.err (!%p3406_p10)
}
  0x53   : > { %3250 = dma.hbm_to_vmem [thread:$0]  (!%p3654_p6), %s4226_s6, 256, %s3650_s2, [#allocation4], %s3520_s27, %s3520_s27, %s3521_s28  }
  0x54   : > { %s4227_s21 = sld [smem:[#allocation20_spill]] }
  0x5a   : > { %s3410_s22 = scalar_lea.hbm %s4227_s21, 256 }
  0x5b   : > { %p3411_p11 = scmp.ne.s32.totalorder %s4227_s21, %s3410_s22  ;;  %p3417_p0 = scmp.lt.u32.totalorder %s3410_s22, %s4227_s21 }
  0x5d   : > { %p3413_p12 = pnand %p3411_p11, %p3670_p8 }
  0x5f   : > { %p3414_p13 = pneg %p3413_p12 }
  0x61   : > { %p3419_p1 = pnand %p3417_p0, %p3414_p13 }
  0x63   : > { %3422 = shalt.err (!%p3419_p1)
}
  0x64   : > { %s3423_s2 = scalar_lea.vmem %s3658_s25, 256  ;;  %p3431_p2 = scmp.lt.s32.totalorder %s3658_s25, %s3658_s25 }
  0x65   : > { %p3424_p5 = scmp.ne.s32.totalorder %s3658_s25, %s3423_s2  ;;  %p3432_p10 = scmp.lt.s32.totalorder %s3423_s2, %s3423_s2 }
  0x67   : > { %p3426_p7 = pnand %p3424_p5, %p3670_p8  ;;  %p3433_p11 = por %p3432_p10, %p3431_p2 }
  0x69   : > { %p3427_p9 = pneg %p3426_p7 }
  0x6b   : > { %p3434_p12 = pnand %p3433_p11, %p3427_p9 }
  0x6d   : > { %3437 = shalt.err (!%p3434_p12)
}
  0x6e   : > { %3256 = dma.hbm_to_vmem [thread:$0]  (!%p3654_p6), %s4227_s21, 256, %s3658_s25, [#allocation7], %s3520_s27, %s3520_s27, %s3521_s28  }
  0x6f   : > { %s4228_s4 = sld [smem:[#allocation21_spill]] }
  0x75   : > { %s3438_s22 = scalar_lea.hbm %s4228_s4, 256 }
  0x76   : > { %p3439_p13 = scmp.ne.s32.totalorder %s4228_s4, %s3438_s22  ;;  %p3445_p5 = scmp.lt.u32.totalorder %s3438_s22, %s4228_s4 }
  0x78   : > { %p3441_p0 = pnand %p3439_p13, %p3670_p8 }
  0x7a   : > { %p3442_p1 = pneg %p3441_p0 }
  0x7c   : > { %p3447_p7 = pnand %p3445_p5, %p3442_p1 }
  0x7e   : > { %3450 = shalt.err (!%p3447_p7)
}
  0x7f   : > { %s3451_s2 = scalar_lea.vmem %s568_s26, 256  ;;  %p3459_p11 = scmp.lt.s32.totalorder %s568_s26, %s568_s26 }
  0x80   : > { %p3452_p9 = scmp.ne.s32.totalorder %s568_s26, %s3451_s2  ;;  %p3460_p12 = scmp.lt.s32.totalorder %s3451_s2, %s3451_s2 }
  0x82   : > { %p3454_p2 = pnand %p3452_p9, %p3670_p8  ;;  %p3461_p3 = por %p3460_p12, %p3459_p11 }
  0x84   : > { %p3455_p10 = pneg %p3454_p2 }
  0x86   : > { %p3462_p4 = pnand %p3461_p3, %p3455_p10 }
  0x88   : > { %3465 = shalt.err (!%p3462_p4)
}
  0x89   : > { %3259 = dma.hbm_to_vmem [thread:$0]  (!%p3654_p6), %s4228_s4, 256, %s568_s26, [#allocation10], %s3520_s27, %s3520_s27, %s3521_s28  }
  0x8a   : > { %p4229_p13 = scmp.ne.s32.totalorder %s4222_s20, 0 }
  0x8b   : > { %p4230_p8 = scmp.eq.s32.totalorder (!%p4229_p13), %s3636_s30, 0 }
  0x8c   : > { %676 = sbr.rel (%p4229_p13) target bundleno = 2763 (0xacb), region = 96 }
  0x93   : > { %3497 = dma.done.wait (%p4230_p8), [#allocation4], 256   ;;  %p4231_p0 = pmov %p4230_p8 }
  0x95   : > { %3499 = vsyncadd (%p4231_p0), [#allocation4], 4294967040  ;;  %p4232_p3 = pmov %p4231_p0 }
  0x96   : > { %p4233_p4 = pmov %p4231_p0 }
  0x97   : > { %3501 = dma.done.wait (%p4232_p3), [#allocation7], 512  }
  0x98   : > { %3503 = vsyncadd (%p4233_p4), [#allocation7], 4294966784  ;;  %p4234_p1 = pmov %p4231_p0 }
  0x99   : > { %p4235_p6 = pmov %p4231_p0 }
  0x9a   : > { %3505 = dma.done.wait (%p4234_p1), [#allocation10], 256  }
  0x9b   : > { %3507 = vsyncadd (%p4235_p6), [#allocation10], 4294967040  ;;  %p785_p5 = scmp.lt.s32.totalorder %s3636_s30, 1  ;;  %s4236_s9 = sld [smem:[#allocation25_spill]] }
  0x9c   : > { %s4237_s10 = sld [smem:[#allocation26_spill]]  ;;  %s4238_s11 = sld [smem:[#allocation27_spill]] }
  0x9d   : > { %s3784_s19 = scalar_select %p785_p5, %s3636_s30, 1 }
  0x9e   : > { %s4239_s12 = sld [smem:[#allocation28_spill]]  ;;  %s4241_s26 = sld [smem:[#allocation30_spill]] }
  0x9f   : > { %s2665_s27 = sshll.u32 %s3784_s19, 6  ;;  %s2673_s23 = sshll.u32 %s3784_s19, 7 }
  0xa0   : > { %s3814_s28 = scalar_lea.vmem %s4188_s13, %s2665_s27  ;;  %s3819_s18 = scalar_lea.vmem %s4189_s14, %s2665_s27 }
  0xa1   : > { %s3794_s17 = scalar_lea.vmem %s4236_s9, %s2665_s27  ;;  %s3828_s2 = scalar_lea.vmem %s4191_s16, %s2665_s27 }
  0xa2   : > { %s3799_s24 = scalar_lea.vmem %s4237_s10, %s2665_s27  ;;  %s3804_s1 = scalar_lea.vmem %s4238_s11, %s2665_s27 }
  0xa3   : > { %s4240_s10 = sld [smem:[#allocation29_spill]]  ;;  %p4242_p7 = scmp.ne.s32.totalorder %s3636_s30, 0 }
  0xa4   : > { %s3809_s5 = scalar_lea.vmem %s4239_s12, %s2665_s27  ;;  %s3839_s7 = scalar_lea.vmem %s4241_s26, %s2673_s23  ;;  %vm842_vm0 = vcmask (!%p4242_p7), 523264  }
  0xa5   : > { %839 = sbr.rel (%p4242_p7) target bundleno = 173 (0xad), region = 116  ;;  %s4243_s3 = sld [smem:[#allocation17_spill]] (!%p4242_p7) }
  0xa9   : > { %s3833_s20 = scalar_lea.vmem %s4240_s10, %s2665_s27 }
  0xab   : > { %v840_v0 = vld [vmem:[%s4243_s3] sm:$0xff] (!%p4242_p7)  ;;  %v841_v1 = vld [vmem:[%s4243_s3 + $0x8] sm:$0xff] (!%p4242_p7) }
  0xac   : > { %843 = vst.msk [vmem:[#allocation2] sm:$0xff] %vm842_vm0, %v840_v0  ;;  %844 = vst.msk [vmem:[#allocation2 + $0x8] sm:$0xff] %vm842_vm0, %v841_v1 }
  0xad PF: > { %vm849_vm1 = vcmask 523264   ;;  %v874_v8 = vld [vmem:[%s3794_s17] sm:$0xff]  ;;  %v875_v9 = vld [vmem:[%s3794_s17 + $0x8] sm:$0xff]  ;;  %v876_v14 = vld [vmem:[%s3794_s17 + $0x10] sm:$0xff]  ;;  %s4244_s11 = scalar_lea.vmem %s4183_s8, %s3784_s19  ;;  %vm1325_vm2 = vcmask 130048   ;;  %s3522_s12 = smov 112  }
  0xae   : > { %v963_v10 = vld [vmem:[%s3799_s24] sm:$0xff]  ;;  %v3023_v11 = vpack.c.bf16 %v875_v9, %v874_v8  ;;  %v964_v12 = vld [vmem:[%s3799_s24 + $0x8] sm:$0xff]  ;;  %v877_v15 = vld [vmem:[%s3794_s17 + $0x18] sm:$0xff]  ;;  %s3523_s27 = smov 96   ;;  %s3524_s22 = smov 16   ;;  %vm1850_vm4 = vcmask 261120  }
  0xaf   : > { %v3039_v13 = vpack.c.bf16 %v964_v12, %v963_v10  ;;  %v965_v16 = vld [vmem:[%s3799_s24 + $0x10] sm:$0xff]  ;;  %v3027_v17 = vpack.c.bf16 %v877_v15, %v876_v14  ;;  %v966_v18 = vld [vmem:[%s3799_s24 + $0x18] sm:$0xff]  ;;  %v878_v20 = vld [vmem:[%s3794_s17 + $0x20] sm:$0xff]  ;;  %s3525_s6 = smov 32   ;;  %vm1853_vm5 = vcmask 392192   ;;  %s4248_s0 = scalar_lea.vmem %s4190_s15, %s3784_s19 }
  0xb0   : > { %3024 = vmatprep.subr.bf16.mxu0 %v3023_v11  ;;  %v3043_v19 = vpack.c.bf16 %v966_v18, %v965_v16  ;;  %v879_v21 = vld [vmem:[%s3794_s17 + $0x28] sm:$0xff]  ;;  %v967_v22 = vld [vmem:[%s3799_s24 + $0x20] sm:$0xff]  ;;  %v880_v26 = vld [vmem:[%s3794_s17 + $0x30] sm:$0xff]  ;;  %p2657_p9 = scmp.ne.s32.totalorder %s3636_s30, 1 }
  0xb1   : > { %3040 = vmatprep.subr.bf16.mxu1 %v3039_v13  ;;  %3026 = vmatpush3.bf16.msra.mxu0 %v3023_v11  ;;  %v3031_v23 = vpack.c.bf16 %v879_v21, %v878_v20  ;;  %v968_v24 = vld [vmem:[%s3799_s24 + $0x28] sm:$0xff]  ;;  %v881_v27 = vld [vmem:[%s3794_s17 + $0x38] sm:$0xff]  ;;  %v969_v28 = vld [vmem:[%s3799_s24 + $0x30] sm:$0xff]  ;;  %s4249_s9 = sld [smem:[#allocation24_spill]] (!%p2657_p9) }
  0xb2   : > { %3042 = vmatpush3.bf16.msra.mxu1 %v3039_v13  ;;  %3028 = vmatprep.subr.bf16.mxu0 %v3027_v17  ;;  %v3047_v25 = vpack.c.bf16 %v968_v24, %v967_v22  ;;  %v3035_v29 = vpack.c.bf16 %v881_v27, %v880_v26  ;;  %v970_v30 = vld [vmem:[%s3799_s24 + $0x38] sm:$0xff]  ;;  %v1046_v32 = vld [vmem:[%s3804_s1] sm:$0xff]  ;;  %v1047_v33 = vld [vmem:[%s3804_s1 + $0x8] sm:$0xff] }
  0xb3   : > { %v3849_v2 = vld [vmem:[#allocation2] sm:$0xff]  ;;  %v3851_v3 = vld [vmem:[#allocation2 + $0x8] sm:$0xff]  ;;  %3044 = vmatprep.subr.bf16.mxu1 %v3043_v19  ;;  %v3051_v31 = vpack.c.bf16 %v970_v30, %v969_v28  ;;  %v3055_v35 = vpack.c.bf16 %v1047_v33, %v1046_v32  ;;  %v1048_v49 = vld [vmem:[%s3804_s1 + $0x10] sm:$0xff] }
  0xb4   : > { %v847_v4 = vmul.f32 %v3849_v2, %v3849_v2  ;;  %v848_v5 = vmul.f32 %v3851_v3, %v3851_v3  ;;  %v1129_v34 = vld [vmem:[%s3809_s5] sm:$0xff]  ;;  %v1130_v36 = vld [vmem:[%s3809_s5 + $0x8] sm:$0xff]  ;;  %v1049_v51 = vld [vmem:[%s3804_s1 + $0x18] sm:$0xff] }
  0xb5   : > { %3030 = vmatpush3.bf16.msra.mxu0 %v3027_v17  ;;  %v3071_v37 = vpack.c.bf16 %v1130_v36, %v1129_v34  ;;  %v2619_v45 = vld [vmem:[%s4244_s11] ss:$0 sm:$0xff]  ;;  %v1131_v52 = vld [vmem:[%s3809_s5 + $0x10] sm:$0xff]  ;;  %v1132_v53 = vld [vmem:[%s3809_s5 + $0x18] sm:$0xff]  ;;  %v3059_v56 = vpack.c.bf16 %v1049_v51, %v1048_v49 }
  0xb6   : > { %v850_v6 = vsel %vm849_vm1, %v847_v4, 0.0  ;;  %v853_v7 = vsel %vm849_vm1, %v848_v5, 0.0  ;;  %3046 = vmatpush3.bf16.msra.mxu1 %v3043_v19  ;;  %3032 = vmatprep.subr.bf16.mxu0 %v3031_v23  ;;  %v1050_v55 = vld [vmem:[%s3804_s1 + $0x20] sm:$0xff]  ;;  %v3075_v57 = vpack.c.bf16 %v1132_v53, %v1131_v52  ;;  %v1051_v58 = vld [vmem:[%s3804_s1 + $0x28] sm:$0xff]  ;;  %v1052_v63 = vld [vmem:[%s3804_s1 + $0x30] sm:$0xff] }
  0xb7   : > { %851 = vadd.xlane.f32.xlu0 %v850_v6  ;;  %3048 = vmatprep.subr.bf16.mxu1 %v3047_v25  ;;  %v1133_v59 = vld [vmem:[%s3809_s5 + $0x20] sm:$0xff]  ;;  %v1134_v60 = vld [vmem:[%s3809_s5 + $0x28] sm:$0xff]  ;;  %v3063_v61 = vpack.c.bf16 %v1051_v58, %v1050_v55  ;;  %v1053_v0 = vld [vmem:[%s3804_s1 + $0x38] sm:$0xff]  ;;  %s4247_s1 = sld [smem:[#allocation22_spill]] }
  0xb8   : > { %v3079_v62 = vpack.c.bf16 %v1134_v60, %v1133_v59  ;;  %v1135_v1 = vld [vmem:[%s3809_s5 + $0x30] sm:$0xff]  ;;  %v1136_v4 = vld [vmem:[%s3809_s5 + $0x38] sm:$0xff]  ;;  %v3067_v5 = vpack.c.bf16 %v1053_v0, %v1052_v63  ;;  %v1213_v8 = vld [vmem:[%s3814_s28 + $0x8] sm:$0xff] }
  0xb9   : > { %3034 = vmatpush3.bf16.msra.mxu0 %v3031_v23  ;;  %v3083_v6 = vpack.c.bf16 %v1136_v4, %v1135_v1  ;;  %v1214_v10 = vld [vmem:[%s3814_s28 + $0x10] sm:$0xff]  ;;  %v1215_v11 = vld [vmem:[%s3814_s28 + $0x18] sm:$0xff]  ;;  %v1216_v13 = vld [vmem:[%s3814_s28 + $0x20] sm:$0xff] }
  0xba   : > { %3050 = vmatpush3.bf16.msra.mxu1 %v3047_v25  ;;  %3036 = vmatprep.subr.bf16.mxu0 %v3035_v29  ;;  %v3091_v12 = vpack.c.bf16 %v1215_v11, %v1214_v10  ;;  %v1217_v14 = vld [vmem:[%s3814_s28 + $0x28] sm:$0xff]  ;;  %v1218_v16 = vld [vmem:[%s3814_s28 + $0x30] sm:$0xff]  ;;  %v1219_v17 = vld [vmem:[%s3814_s28 + $0x38] sm:$0xff] }
  0xbb   : > { %854 = vadd.xlane.f32.xlu0 %v853_v7  ;;  %3052 = vmatprep.subr.bf16.mxu1 %v3051_v31  ;;  %v1212_v7 = vld [vmem:[%s3814_s28] sm:$0xff]  ;;  %v3095_v15 = vpack.c.bf16 %v1217_v14, %v1216_v13  ;;  %v3099_v18 = vpack.c.bf16 %v1219_v17, %v1218_v16  ;;  %v1296_v19 = vld [vmem:[#allocation3 + $0x8] sm:$0xff]  ;;  %v1300_v20 = vld [vmem:[#allocation6 + $0x8] sm:$0xff] }
  0xbc   : > { %v3087_v9 = vpack.c.bf16 %v1213_v8, %v1212_v7  ;;  %v1295_v21 = vld [vmem:[#allocation3] sm:$0xff]  ;;  %v1299_v22 = vld [vmem:[#allocation6] sm:$0xff]  ;;  %v1306_v33 = vld [vmem:[#allocation8 + $0x8] sm:$0xff] }
  0xbd   : > { %3038 = vmatpush3.bf16.msra.mxu0 %v3035_v29  ;;  %v1310_v34 = vld [vmem:[#allocation9 + $0x8] sm:$0xff]  ;;  %v1309_v36 = vld [vmem:[#allocation9] sm:$0xff]  ;;  %vm3923_vm3 = vmpackc.low %vm1325_vm2, %vm1325_vm2 }
  0xbe   : > { %3054 = vmatpush3.bf16.msra.mxu1 %v3051_v31  ;;  %3056 = vmatprep.subr.bf16.mxu0 %v3055_v35  ;;  %v1322_v0 = vld [vmem:[%s4247_s1 + $0x8] sm:$0xff]  ;;  %v1321_v1 = vld [vmem:[%s4247_s1] sm:$0xff]  ;;  %v1324_v10 = vld [vmem:[%s4247_s1 + $0x18] sm:$0xff] }
  0xbf   : > { %3072 = vmatprep.subr.bf16.mxu1 %v3071_v37  ;;  %v1323_v11 = vld [vmem:[%s4247_s1 + $0x10] sm:$0xff] }
 0x144   : > { %v852_v38 = vpop.xlane.xlu0 %851 }
 0x145   : > { %v857_v39 = vmul.f32 0.015625, %v852_v38 }
 0x147   : > { %v859_v40 = vadd.f32 1e-05, %v857_v39 }
 0x148   : > { %v855_v41 = vpop.xlane.xlu0 %854 }
 0x149   : > { %3302 = vrsqrt.f32 %v859_v40  ;;  %v858_v42 = vmul.f32 0.015625, %v855_v41 }
 0x14b   : > { %v860_v43 = vadd.f32 1e-05, %v858_v42 }
 0x14d   : > { %3304 = vrsqrt.f32 %v860_v43 }
 0x153   : > { %v3303_v44 = vpop.eup %3302 }
 0x154   : > { %v863_v46 = vmul.f32 %v3303_v44, %v3849_v2 }
 0x156   : > { %v872_v47 = vmul.f32 %v2619_v45, %v863_v46 }
 0x157   : > { %v3305_v48 = vpop.eup %3304 }
 0x158   : > { %v864_v50 = vmul.f32 %v3305_v48, %v3851_v3  ;;  %2812 = vmatprep.mubr.msk.f32.mxu0 %vm849_vm1, %v872_v47  ;;  %2831 = vmatprep.mubr.msk.f32.mxu1 %vm849_vm1, %v872_v47 }
 0x15a   : > { %v873_v54 = vmul.f32 %v2619_v45, %v864_v50 }
 0x15c   : > { %2813 = vmatmul.mubr.msk.f32.vlgmr.msra.gmra.mrb[0].mxu0 %vm849_vm1, %v873_v54  ;;  %2832 = vmatmul.mubr.msk.f32.vlgmr.msra.gmra.mrb[0].mxu1 %vm849_vm1, %v873_v54 }
 0x15d   : > { %3058 = vmatpush3.bf16.msra.mxu0 %v3055_v35  ;;  %3074 = vmatpush3.bf16.msra.mxu1 %v3071_v37  ;;  %v1305_v35 = vld [vmem:[#allocation8] sm:$0xff] }
 0x15e   : > { %2850 = vmatprep.mubr.msk.f32.mxu0 %vm849_vm1, %v872_v47  ;;  %2869 = vmatprep.mubr.msk.f32.mxu1 %vm849_vm1, %v872_v47 }
 0x15f   : > { %3060 = vmatprep.subr.bf16.mxu0 %v3059_v56  ;;  %3076 = vmatprep.subr.bf16.mxu1 %v3075_v57 }
 0x161   : > { %3062 = vmatpush3.bf16.msra.mxu0 %v3059_v56  ;;  %3078 = vmatpush3.bf16.msra.mxu1 %v3075_v57 }
 0x162   : > { %3064 = vmatprep.subr.bf16.mxu0 %v3063_v61  ;;  %3080 = vmatprep.subr.bf16.mxu1 %v3079_v62 }
 0x165   : > { %3066 = vmatpush3.bf16.msra.mxu0 %v3063_v61  ;;  %3082 = vmatpush3.bf16.msra.mxu1 %v3079_v62 }
 0x166   : > { %3068 = vmatprep.subr.bf16.mxu0 %v3067_v5  ;;  %3084 = vmatprep.subr.bf16.mxu1 %v3083_v6 }
 0x169   : > { %3070 = vmatpush3.bf16.msra.mxu0 %v3067_v5  ;;  %3086 = vmatpush3.bf16.msra.mxu1 %v3083_v6 }
 0x16a   : > { %3088 = vmatprep.subr.bf16.mxu0 %v3087_v9 }
 0x16c   : > { %2851 = vmatmul.mubr.msk.f32.vlgmr.msra.gmra.mrb[2].mxu0 %vm849_vm1, %v873_v54  ;;  %2870 = vmatmul.mubr.msk.f32.vlgmr.msra.gmra.mrb[2].mxu1 %vm849_vm1, %v873_v54 }
 0x16d   : > { %3090 = vmatpush3.bf16.msra.mxu0 %v3087_v9  ;;  %2888 = vmatprep.mubr.msk.f32.mxu0 %vm849_vm1, %v872_v47 }
 0x16e   : > { %3092 = vmatprep.subr.bf16.mxu0 %v3091_v12 }
 0x171   : > { %3094 = vmatpush3.bf16.msra.mxu0 %v3091_v12 }
 0x172   : > { %3096 = vmatprep.subr.bf16.mxu0 %v3095_v15 }
 0x175   : > { %3098 = vmatpush3.bf16.msra.mxu0 %v3095_v15 }
 0x176   : > { %3100 = vmatprep.subr.bf16.mxu0 %v3099_v18 }
 0x179   : > { %3102 = vmatpush3.bf16.msra.mxu0 %v3099_v18 }
 0x17c   : > { %2889 = vmatmul.mubr.msk.f32.vlgmr.msra.gmra.mrb[4].mxu0 %vm849_vm1, %v873_v54 }
 0x22f   : > { %v2814_v23 = vpop.f32.mrb[0].mxu0  ;;  %v2833_v24 = vpop.f32.mrb[0].mxu1 }
 0x230   : > { %v1298_v25 = vmul.f32 %v2814_v23, %v1296_v19  ;;  %v1302_v26 = vmul.f32 %v2833_v24, %v1300_v20  ;;  %v954_v27 = vpop.f32.mrb[1].mxu0  ;;  %v1037_v28 = vpop.f32.mrb[1].mxu1 }
 0x231   : > { %v1297_v29 = vmul.f32 %v1295_v21, %v954_v27  ;;  %v1301_v30 = vmul.f32 %v1299_v22, %v1037_v28 }
 0x232   : > { %v1304_v31 = vadd.f32 %v1302_v26, %v1298_v25 }
 0x233   : > { %v1303_v32 = vadd.f32 %v1301_v30, %v1297_v29 }
 0x235   : > { %1317 = vrot.lane.b32.xlu1 %v1303_v32, %s3522_s12  ;;  %2895 = vmatprep.mubr.msk.f32.mxu0 %vm1325_vm2, %v1303_v32 }
 0x239   : > { %1319 = vrot.lane.b32.xlu1 %v1304_v31, %s3522_s12 }
 0x23d   : > { %1566 = vrot.lane.b32.xlu1 %v1303_v32, %s3523_s27 }
 0x23f   : > { %v2852_v37 = vpop.f32.mrb[2].mxu0  ;;  %v2871_v38 = vpop.f32.mrb[2].mxu1 }
 0x240   : > { %v1308_v39 = vmul.f32 %v2852_v37, %v1306_v33  ;;  %v1312_v40 = vmul.f32 %v2871_v38, %v1310_v34  ;;  %v1120_v41 = vpop.f32.mrb[3].mxu0  ;;  %v1203_v42 = vpop.f32.mrb[3].mxu1 }
 0x241   : > { %v1307_v43 = vmul.f32 %v1305_v35, %v1120_v41  ;;  %v1311_v44 = vmul.f32 %v1309_v36, %v1203_v42  ;;  %1568 = vrot.lane.b32.xlu1 %v1304_v31, %s3523_s27 }
 0x242   : > { %v1314_v45 = vadd.f32 %v1312_v40, %v1308_v39 }
 0x243   : > { %v1313_v46 = vadd.f32 %v1311_v44, %v1307_v43 }
 0x245   : > { %v3103_v48 = vpack.c.bf16 %v1314_v45, %v1313_v46  ;;  %v3292_v49 = vpack.i.bf16 %v1314_v45, %v1313_v46 }
 0x247   : > { %3293 = vrot.lane.b32.xlu0 %v3292_v49, %s3522_s12  ;;  %3105 = vmatprep.subr.msk.bf16.mxu0 %vm3923_vm3, %v3103_v48 }
 0x248   : > { %3108 = vmatpush3.bf16.xpose.msk.msra.mxu0 %vm3923_vm3, %v3103_v48 }
 0x24f   : > { %v3932_v50 = vpop.f32.mrb[4].mxu0  ;;  %2896 = vmatmul.mubr.msk.f32.vlgmr.msra.gmra.mrb[6].mxu0 %vm1325_vm2, %v1304_v31 }
 0x250   : > { %v3935_v51 = vpop.f32.mrb[5].mxu0 }
 0x251   : > { %v3297_v52 = vpack.i.bf16 %v3932_v50, %v3935_v51  ;;  %v3109_v53 = vpack.c.bf16 %v3932_v50, %v3935_v51 }
 0x253   : > { %3110 = vmatprep.subr.bf16.mxu1 %v3109_v53 }
 0x254   : > { %3112 = vmatpush3.bf16.msra.mxu1 %v3109_v53 }
 0x2a7   : > { %v1318_v54 = vpop.permute.xlu1 %1317 }
 0x2a8   : > { %1570 = vrot.lane.b32.xlu1 %v1318_v54, %s3523_s27  ;;  %2898 = vmatprep.mubr.msk.f32.mxu0 %vm1325_vm2, %v1318_v54 }
 0x2ab   : > { %v1320_v55 = vpop.permute.xlu1 %1319 }
 0x2ac   : > { %1572 = vrot.lane.b32.xlu1 %v1320_v55, %s3523_s27  ;;  %2899 = vmatmul.mubr.msk.f32.gmra.mrb[8].mxu0 %vm1325_vm2, %v1320_v55 }
 0x2af   : > { %v1567_v56 = vpop.permute.xlu1 %1566 }
 0x2b0   : > { %2915 = vmatprep.mubr.msk.f32.mxu0 %vm1325_vm2, %v1567_v56 }
 0x2b3   : > { %v1569_v61 = vpop.permute.xlu1 %1568 }
 0x2b9   : > { %v3294_v57 = vpop.permute.xlu0 %3293 }
 0x2ba   : > { %v3296_v58 = vunpack.i.h.bf16 %v3294_v57  ;;  %v3295_v59 = vunpack.i.l.bf16 %v3294_v57 }
 0x2bc   : > { %v3113_v60 = vpack.c.bf16 %v3296_v58, %v3295_v59 }
 0x2be   : > { %3115 = vmatprep.subr.msk.bf16.mxu0 %vm3923_vm3, %v3113_v60 }
 0x2bf   : > { %3118 = vmatpush3.bf16.xpose.msk.msra.mxu0 %vm3923_vm3, %v3113_v60 }
 0x2c6   : > { %2916 = vmatmul.mubr.msk.f32.vlgmr.msra.gmra.mrb[10].mxu0 %vm1325_vm2, %v1569_v61 }
 0x31a   : > { %v1571_v62 = vpop.permute.xlu1 %1570 }
 0x31b   : > { %2918 = vmatprep.mubr.msk.f32.mxu0 %vm1325_vm2, %v1571_v62 }
 0x31e   : > { %v1573_v63 = vpop.permute.xlu1 %1572 }
 0x31f   : > { %2919 = vmatmul.mubr.msk.f32.gmra.mrb[12].mxu0 %vm1325_vm2, %v1573_v63 }
 0x322   : > { %v2897_v4 = vpop.f32.mrb[6].mxu0 }
 0x323   : > { %v1412_v5 = vadd.f32 %v2897_v4, %v1322_v0  ;;  %v1406_v6 = vpop.f32.mrb[7].mxu0 }
 0x324   : > { %v1407_v7 = vadd.f32 %v1406_v6, %v1321_v1 }
 0x325   : > { %v1428_v8 = vsel %vm1325_vm2, %v1412_v5, -inf }
 0x326   : > { %1429 = vmax.xlane.f32.xlu0 %v1428_v8  ;;  %v1425_v9 = vsel %vm1325_vm2, %v1407_v7, -inf }
 0x327   : > { %1426 = vmax.xlane.f32.xlu1 %v1425_v9 }
 0x37f   : > { %v2900_v12 = vpop.f32.mrb[8].mxu0 }
 0x380   : > { %v1422_v13 = vadd.f32 %v2900_v12, %v1324_v10  ;;  %v1416_v14 = vpop.f32.mrb[9].mxu0 }
 0x381   : > { %v1417_v15 = vadd.f32 %v1416_v14, %v1323_v11 }
 0x382   : > { %v1434_v16 = vsel %vm1325_vm2, %v1422_v13, -inf }
 0x383   : > { %1435 = vmax.xlane.f32.xlu0 %v1434_v16  ;;  %v1431_v17 = vsel %vm1325_vm2, %v1417_v15, -inf  ;;  %v1856_v16 = vld [vmem:[%s3819_s18] sm:$0xff] }
 0x384   : > { %1432 = vmax.xlane.f32.xlu1 %v1431_v17  ;;  %v1857_v17 = vld [vmem:[%s3819_s18 + $0x8] sm:$0xff] }
 0x399   : > { %v2917_v18 = vpop.f32.mrb[10].mxu0 }
 0x39a   : > { %v1662_v19 = vadd.f32 %v2917_v18, %v1322_v0  ;;  %v1656_v20 = vpop.f32.mrb[11].mxu0  ;;  %v1858_v18 = vld [vmem:[%s3819_s18 + $0x10] sm:$0xff] }
 0x39b   : > { %v1657_v21 = vadd.f32 %v1656_v20, %v1321_v1  ;;  %v1859_v20 = vld [vmem:[%s3819_s18 + $0x18] sm:$0xff] }
 0x39c   : > { %v1678_v22 = vsel %vm1325_vm2, %v1662_v19, -inf }
 0x39d   : > { %1679 = vmax.xlane.f32.xlu0 %v1678_v22  ;;  %v1675_v23 = vsel %vm1325_vm2, %v1657_v21, -inf }
 0x39e   : > { %1676 = vmax.xlane.f32.xlu1 %v1675_v23 }
 0x3b3   : > { %v1430_v24 = vpop.xlane.xlu0 %1429 }
 0x3b4   : > { %v1438_v25 = vsub.f32 %v1412_v5, %v1430_v24  ;;  %v1427_v26 = vpop.xlane.xlu1 %1426 }
 0x3b5   : > { %v1437_v27 = vsub.f32 %v1407_v7, %v1427_v26 }
 0x3b6   : > { %v1443_v28 = vmul.f32 1.442695, %v1438_v25 }
 0x3b7   : > { %v1441_v29 = vmul.f32 1.442695, %v1437_v27 }
 0x3b9   : > { %3306 = vpow2.f32 %v1441_v29 }
 0x3ba   : > { %3308 = vpow2.f32 %v1443_v28 }
 0x3c3   : > { %v3971_v30 = vpop.eup %3306 }
 0x3c4   : > { %v3973_v31 = vpop.eup %3308  ;;  %2905 = vmatprep.mubr.msk.f32.mxu1 %vm1325_vm2, %v3971_v30 }
 0x3c5   : > { %2906 = vmatmul.mubr.msk.f32.vlgmr.msra.gmra.mrb[4].mxu1 %vm1325_vm2, %v3973_v31 }
 0x3f2   : > { %v2920_v32 = vpop.f32.mrb[12].mxu0 }
 0x3f3   : > { %v1672_v33 = vadd.f32 %v2920_v32, %v1324_v10  ;;  %v1666_v34 = vpop.f32.mrb[13].mxu0 }
 0x3f4   : > { %v1667_v35 = vadd.f32 %v1666_v34, %v1323_v11  ;;  %v1546_v11 = vsel %vm1325_vm2, %v3971_v30, 0.0  ;;  %v1860_v30 = vld [vmem:[%s3819_s18 + $0x20] sm:$0xff]  ;;  %v1862_v34 = vld [vmem:[%s3819_s18 + $0x30] sm:$0xff] }
 0x3f5   : > { %v1684_v36 = vsel %vm1325_vm2, %v1672_v33, -inf }
 0x3f6   : > { %1685 = vmax.xlane.f32.xlu0 %v1684_v36  ;;  %v1681_v37 = vsel %vm1325_vm2, %v1667_v35, -inf }
 0x3f7   : > { %1682 = vmax.xlane.f32.xlu1 %v1681_v37 }
 0x408   : > { %3298 = vrot.lane.b32.xlu1 %v3297_v52, %s3522_s12 }
 0x410   : > { %v1436_v38 = vpop.xlane.xlu0 %1435 }
 0x411   : > { %v1440_v39 = vsub.f32 %v1422_v13, %v1436_v38  ;;  %v1433_v40 = vpop.xlane.xlu1 %1432  ;;  %v1549_v13 = vsel %vm1325_vm2, %v3973_v31, 0.0  ;;  %v1861_v31 = vld [vmem:[%s3819_s18 + $0x28] sm:$0xff] }
 0x412   : > { %v1439_v41 = vsub.f32 %v1417_v15, %v1433_v40  ;;  %v3131_v32 = vpack.c.bf16 %v1861_v31, %v1860_v30  ;;  %v1978_v30 = vld [vmem:[%s3828_s2 + $0x30] sm:$0xff]  ;;  %v1979_v31 = vld [vmem:[%s3828_s2 + $0x38] sm:$0xff] }
 0x413   : > { %v1447_v42 = vmul.f32 1.442695, %v1440_v39 }
 0x414   : > { %v1445_v43 = vmul.f32 1.442695, %v1439_v41 }
 0x415   : > { %3310 = vpow2.f32 %v1447_v42 }
 0x416   : > { %3312 = vpow2.f32 %v1445_v43 }
 0x41f   : > { %v3311_v44 = vpop.eup %3310 }
 0x420   : > { %v3313_v45 = vpop.eup %3312  ;;  %v1555_v46 = vsel %vm1325_vm2, %v3311_v44, 0.0 }
 0x421   : > { %1556 = vadd.xlane.f32.xlu0 %v1555_v46  ;;  %2908 = vmatprep.mubr.msk.f32.mxu1 %vm1325_vm2, %v3313_v45  ;;  %v1552_v47 = vsel %vm1325_vm2, %v3313_v45, 0.0 }
 0x422   : > { %2909 = vmatmul.mubr.msk.f32.gmra.mrb[6].mxu1 %vm1325_vm2, %v3311_v44 }
 0x425   : > { %1553 = vadd.xlane.f32.xlu0 %v1552_v47 }
 0x42a   : > { %v1680_v48 = vpop.xlane.xlu0 %1679 }
 0x42b   : > { %v1688_v49 = vsub.f32 %v1662_v19, %v1680_v48  ;;  %v1677_v50 = vpop.xlane.xlu1 %1676  ;;  %v3123_v19 = vpack.c.bf16 %v1857_v17, %v1856_v16  ;;  %v2062_v16 = vld [vmem:[%s3833_s20 + $0x8] sm:$0xff] }
 0x42c   : > { %v1687_v51 = vsub.f32 %v1657_v21, %v1677_v50  ;;  %v3127_v21 = vpack.c.bf16 %v1859_v20, %v1858_v18  ;;  %v1974_v18 = vld [vmem:[%s3828_s2 + $0x10] sm:$0xff] }
 0x42d   : > { %v1693_v52 = vmul.f32 1.442695, %v1688_v49  ;;  %3124 = vmatprep.subr.bf16.mxu0 %v3123_v19  ;;  %v2063_v20 = vld [vmem:[%s3833_s20 + $0x10] sm:$0xff] }
 0x42e   : > { %v1691_v53 = vmul.f32 1.442695, %v1687_v51  ;;  %3126 = vmatpush3.bf16.msra.mxu0 %v3123_v19  ;;  %v1975_v19 = vld [vmem:[%s3828_s2 + $0x18] sm:$0xff] }
 0x42f   : > { %3314 = vpow2.f32 %v1693_v52  ;;  %3128 = vmatprep.subr.bf16.mxu0 %v3127_v21 }
 0x430   : > { %3316 = vpow2.f32 %v1691_v53 }
 0x432   : > { %3130 = vmatpush3.bf16.msra.mxu0 %v3127_v21  ;;  %v3143_v21 = vpack.c.bf16 %v1975_v19, %v1974_v18 }
 0x433   : > { %3132 = vmatprep.subr.bf16.mxu0 %v3131_v32 }
 0x436   : > { %3134 = vmatpush3.bf16.msra.mxu0 %v3131_v32  ;;  %v2067_v32 = vld [vmem:[%s3833_s20 + $0x30] sm:$0xff] }
 0x439   : > { %v3315_v54 = vpop.eup %3314 }
 0x43a   : > { %v3317_v55 = vpop.eup %3316  ;;  %v1807_v56 = vsel %vm1325_vm2, %v3315_v54, 0.0 }
 0x43b   : > { %1808 = vadd.xlane.f32.xlu0 %v1807_v56  ;;  %2925 = vmatprep.mubr.msk.f32.mxu1 %vm1325_vm2, %v3317_v55  ;;  %v1804_v57 = vsel %vm1325_vm2, %v3317_v55, 0.0 }
 0x43f   : > { %1805 = vadd.xlane.f32.xlu0 %v1804_v57 }
 0x483   : > { %v1686_v58 = vpop.xlane.xlu0 %1685 }
 0x484   : > { %v1690_v59 = vsub.f32 %v1672_v33, %v1686_v58  ;;  %v1683_v60 = vpop.xlane.xlu1 %1682 }
 0x485   : > { %v1689_v61 = vsub.f32 %v1667_v35, %v1683_v60  ;;  %v1863_v35 = vld [vmem:[%s3819_s18 + $0x38] sm:$0xff]  ;;  %s3526_s18 = smov 48  }
 0x486   : > { %v1697_v62 = vmul.f32 1.442695, %v1690_v59  ;;  %v3135_v36 = vpack.c.bf16 %v1863_v35, %v1862_v34  ;;  %v3151_v34 = vpack.c.bf16 %v1979_v31, %v1978_v30 }
 0x487   : > { %v1695_v63 = vmul.f32 1.442695, %v1689_v61 }
 0x488   : > { %3318 = vpow2.f32 %v1697_v62  ;;  %v3299_v0 = vpop.permute.xlu1 %3298  ;;  %3136 = vmatprep.subr.bf16.mxu0 %v3135_v36 }
 0x489   : > { %3320 = vpow2.f32 %v1695_v63  ;;  %v3301_v1 = vunpack.i.h.bf16 %v3299_v0  ;;  %v3300_v4 = vunpack.i.l.bf16 %v3299_v0  ;;  %3138 = vmatpush3.bf16.msra.mxu0 %v3135_v36 }
 0x48b   : > { %v3119_v5 = vpack.c.bf16 %v3301_v1, %v3300_v4 }
 0x48d   : > { %3120 = vmatprep.subr.bf16.mxu1 %v3119_v5 }
 0x48e   : > { %3122 = vmatpush3.bf16.msra.mxu1 %v3119_v5 }
 0x491   : > { %2926 = vmatmul.mubr.msk.f32.vlgmr.msra.gmra.mrb[8].mxu1 %vm1325_vm2, %v3315_v54 }
 0x492   : > { %v3319_v6 = vpop.eup %3318 }
 0x493   : > { %v3321_v7 = vpop.eup %3320  ;;  %v1813_v8 = vsel %vm1325_vm2, %v3319_v6, 0.0 }
 0x494   : > { %1814 = vadd.xlane.f32.xlu1 %v1813_v8  ;;  %2928 = vmatprep.mubr.msk.f32.mxu1 %vm1325_vm2, %v3321_v7  ;;  %v1810_v9 = vsel %vm1325_vm2, %v3321_v7, 0.0 }
 0x495   : > { %1811 = vadd.xlane.f32.xlu0 %v1810_v9  ;;  %2929 = vmatmul.mubr.msk.f32.gmra.mrb[10].mxu1 %vm1325_vm2, %v3319_v6 }
 0x498   : > { %v3997_v10 = vpop.f32.mrb[4].mxu1 }
 0x499   : > { %v4001_v12 = vpop.f32.mrb[5].mxu1  ;;  %1547 = vadd.xlane.f32.xlu0 %v1546_v11 }
 0x49d   : > { %1550 = vadd.xlane.f32.xlu0 %v1549_v13  ;;  %v1972_v13 = vld [vmem:[%s3828_s2] sm:$0xff] }
 0x4ae   : > { %v1557_v14 = vpop.xlane.xlu0 %1556 }
 0x4af   : > { %3322 = vrcp.f32 %v1557_v14  ;;  %v1973_v14 = vld [vmem:[%s3828_s2 + $0x8] sm:$0xff] }
 0x4b2   : > { %v1554_v15 = vpop.xlane.xlu0 %1553 }
 0x4b3   : > { %3324 = vrcp.f32 %v1554_v15  ;;  %v3139_v15 = vpack.c.bf16 %v1973_v14, %v1972_v13 }
 0x4b5   : > { %3140 = vmatprep.subr.bf16.mxu1 %v3139_v15 }
 0x4b6   : > { %3142 = vmatpush3.bf16.msra.mxu1 %v3139_v15 }
 0x4b7   : > { %3144 = vmatprep.subr.bf16.mxu1 %v3143_v21 }
 0x4b9   : > { %v3323_v22 = vpop.eup %3322 }
 0x4ba   : > { %3146 = vmatpush3.bf16.msra.mxu1 %v3143_v21 }
 0x4bd   : > { %v3325_v26 = vpop.eup %3324 }
 0x4c8   : > { %v1809_v28 = vpop.xlane.xlu0 %1808 }
 0x4c9   : > { %3326 = vrcp.f32 %v1809_v28 }
 0x4cc   : > { %v1806_v29 = vpop.xlane.xlu0 %1805 }
 0x4cd   : > { %3328 = vrcp.f32 %v1806_v29 }
 0x4d3   : > { %v3327_v38 = vpop.eup %3326 }
 0x4d7   : > { %v3329_v40 = vpop.eup %3328 }
 0x4f5   : > { %v2910_v23 = vpop.f32.mrb[6].mxu1 }
 0x4f6   : > { %v1565_v24 = vmul.f32 %v3323_v22, %v2910_v23  ;;  %v1537_v25 = vpop.f32.mrb[7].mxu1  ;;  %v2064_v22 = vld [vmem:[%s3833_s20 + $0x18] sm:$0xff]  ;;  %v1976_v23 = vld [vmem:[%s3828_s2 + $0x20] sm:$0xff] }
 0x4f7   : > { %v1564_v27 = vmul.f32 %v3325_v26, %v1537_v25  ;;  %v3159_v25 = vpack.c.bf16 %v2064_v22, %v2063_v20  ;;  %v2065_v26 = vld [vmem:[%s3833_s20 + $0x20] sm:$0xff] }
 0x4f8   : > { %1828 = vrot.lane.b32.xlu0 %v1565_v24, %s3524_s22  ;;  %v1977_v24 = vld [vmem:[%s3828_s2 + $0x28] sm:$0xff] }
 0x4f9   : > { %v3147_v28 = vpack.c.bf16 %v1977_v24, %v1976_v23 }
 0x4fb   : > { %3148 = vmatprep.subr.bf16.mxu1 %v3147_v28 }
 0x4fc   : > { %1826 = vrot.lane.b32.xlu0 %v1564_v27, %s3524_s22  ;;  %v2066_v27 = vld [vmem:[%s3833_s20 + $0x28] sm:$0xff]  ;;  %3150 = vmatpush3.bf16.msra.mxu1 %v3147_v28 }
 0x4fd   : > { %v3163_v29 = vpack.c.bf16 %v2066_v27, %v2065_v26  ;;  %3152 = vmatprep.subr.bf16.mxu1 %v3151_v34 }
 0x500   : > { %3154 = vmatpush3.bf16.msra.mxu1 %v3151_v34 }
 0x521   : > { %v1815_v37 = vpop.xlane.xlu1 %1814 }
 0x522   : > { %v1812_v33 = vpop.xlane.xlu0 %1811 }
 0x523   : > { %3330 = vrcp.f32 %v1812_v33  ;;  %v2068_v33 = vld [vmem:[%s3833_s20 + $0x38] sm:$0xff] }
 0x524   : > { %3332 = vrcp.f32 %v1815_v37  ;;  %v3167_v35 = vpack.c.bf16 %v2068_v33, %v2067_v32 }
 0x526   : > { %v1548_v50 = vpop.xlane.xlu0 %1547 }
 0x527   : > { %3334 = vrcp.f32 %v1548_v50  ;;  %v2159_v50 = vld [vmem:[%s3839_s7 + $0x8] sm:$0xff] }
 0x52a   : > { %v1551_v51 = vpop.xlane.xlu0 %1550 }
 0x52b   : > { %3336 = vrcp.f32 %v1551_v51 }
 0x52d   : > { %v3331_v45 = vpop.eup %3330 }
 0x52e   : > { %v3333_v48 = vpop.eup %3332 }
 0x531   : > { %v3335_v54 = vpop.eup %3334 }
 0x532   : > { %v1562_v56 = vmul.f32 %v3335_v54, %v4001_v12 }
 0x535   : > { %v3337_v58 = vpop.eup %3336 }
 0x536   : > { %v1563_v62 = vmul.f32 %v3337_v58, %v3997_v10  ;;  %v2164_v58 = vld [vmem:[%s3839_s7 + $0x30] sm:$0xff] }
 0x564   : > { %v2927_v39 = vpop.f32.mrb[8].mxu1 }
 0x565   : > { %v1821_v41 = vmul.f32 %v3327_v38, %v2927_v39  ;;  %v1785_v42 = vpop.f32.mrb[9].mxu1 }
 0x566   : > { %v1820_v43 = vmul.f32 %v3329_v40, %v1785_v42 }
 0x567   : > { %1836 = vrot.lane.b32.xlu0 %v1821_v41, %s3525_s6 }
 0x568   : > { %1834 = vrot.lane.b32.xlu1 %v1820_v43, %s3525_s6  ;;  %v2930_v44 = vpop.f32.mrb[10].mxu1 }
 0x569   : > { %v1795_v46 = vpop.f32.mrb[11].mxu1  ;;  %v1823_v49 = vmul.f32 %v3333_v48, %v2930_v44 }
 0x56a   : > { %v1822_v47 = vmul.f32 %v3331_v45, %v1795_v46  ;;  %v1829_v52 = vpop.permute.xlu0 %1828  ;;  %v2652_v45 = vld [vmem:[%s4248_s0] ss:$0 sm:$0xff] }
 0x56b   : > { %v1849_v0 = vsel %vm1325_vm2, %v1563_v62, %v1829_v52  ;;  %v2160_v52 = vld [vmem:[%s3839_s7 + $0x10] sm:$0xff]  ;;  %v2167_v62 = vld [vmem:[%s3839_s7 + $0x48] sm:$0xff] }
 0x56c   : > { %1842 = vrot.lane.b32.xlu0 %v1822_v47, %s3526_s18 }
 0x56e   : > { %v1827_v53 = vpop.permute.xlu0 %1826 }
 0x56f   : > { %v1848_v59 = vsel %vm1325_vm2, %v1562_v56, %v1827_v53  ;;  %v2161_v53 = vld [vmem:[%s3839_s7 + $0x18] sm:$0xff]  ;;  %v2163_v56 = vld [vmem:[%s3839_s7 + $0x28] sm:$0xff] }
 0x570   : > { %1844 = vrot.lane.b32.xlu0 %v1823_v49, %s3526_s18  ;;  %v2158_v49 = vld [vmem:[%s3839_s7] sm:$0xff]  ;;  %v3175_v54 = vpack.c.bf16 %v2161_v53, %v2160_v52  ;;  %v2295_v53 = vld [vmem:[%s4249_s9 + $0x68] sm:$0xff] (!%p2657_p9)  ;;  %s4250_s18 = sld [smem:[#allocation23_spill]] (!%p2657_p9) }
 0x571   : > { %v3171_v51 = vpack.c.bf16 %v2159_v50, %v2158_v49  ;;  %v2290_v50 = vld [vmem:[%s4249_s9 + $0x40] sm:$0xff] (!%p2657_p9) }
 0x573   : > { %3172 = vmatprep.subr.bf16.mxu1 %v3171_v51 }
 0x5d9   : > { %v1837_v55 = vpop.permute.xlu0 %1836 }
 0x5da   : > { %v1835_v57 = vpop.permute.xlu1 %1834  ;;  %v1852_v1 = vsel %vm1850_vm4, %v1849_v0, %v1837_v55  ;;  %v2162_v55 = vld [vmem:[%s3839_s7 + $0x20] sm:$0xff]  ;;  %v2168_v0 = vld [vmem:[%s3839_s7 + $0x50] sm:$0xff] }
 0x5db   : > { %v1851_v60 = vsel %vm1850_vm4, %v1848_v59, %v1835_v57  ;;  %v3179_v57 = vpack.c.bf16 %v2163_v56, %v2162_v55  ;;  %v2165_v59 = vld [vmem:[%s3839_s7 + $0x38] sm:$0xff]  ;;  %v2294_v56 = vld [vmem:[%s4249_s9 + $0x60] sm:$0xff] (!%p2657_p9) }
 0x5de   : > { %v1843_v61 = vpop.permute.xlu0 %1842 }
 0x5df   : > { %v1854_v63 = vsel %vm1853_vm5, %v1851_v60, %v1843_v61  ;;  %v3183_v60 = vpack.c.bf16 %v2165_v59, %v2164_v58  ;;  %v2166_v61 = vld [vmem:[%s3839_s7 + $0x40] sm:$0xff]  ;;  %v3527_v59 = vmov (!%p2657_p9), 0.0  }
 0x5e0   : > { %2947 = vmatprep.mubr.msk.f32.mxu0 %vm849_vm1, %v1854_v63  ;;  %v3187_v63 = vpack.c.bf16 %v2167_v62, %v2166_v61 }
 0x5e2   : > { %v1845_v4 = vpop.permute.xlu0 %1844 }
 0x5e3   : > { %v1855_v5 = vsel %vm1853_vm5, %v1852_v1, %v1845_v4  ;;  %v2169_v1 = vld [vmem:[%s3839_s7 + $0x58] sm:$0xff] }
 0x5e4   : > { %2948 = vmatmul.mubr.msk.f32.vlgmr.msra.gmra.mrb[14].mxu0 %vm849_vm1, %v1855_v5  ;;  %v3191_v4 = vpack.c.bf16 %v2169_v1, %v2168_v0  ;;  %v2170_v5 = vld [vmem:[%s3839_s7 + $0x60] sm:$0xff] }
 0x6b7   : > { %v2949_v6 = vpop.f32.mrb[14].mxu0 }
 0x6b8   : > { %v4022_v7 = vadd.f32 %v2949_v6, %v3851_v3  ;;  %v1936_v8 = vpop.f32.mrb[15].mxu0  ;;  %v2171_v6 = vld [vmem:[%s3839_s7 + $0x68] sm:$0xff] }
 0x6b9   : > { %v4025_v9 = vadd.f32 %v1936_v8, %v3849_v2  ;;  %v2061_v2 = vld [vmem:[%s3833_s20] sm:$0xff]  ;;  %v3195_v8 = vpack.c.bf16 %v2171_v6, %v2170_v5 }
 0x6ba   : > { %v1948_v10 = vmul.f32 %v4022_v7, %v4022_v7  ;;  %v3155_v17 = vpack.c.bf16 %v2062_v16, %v2061_v2  ;;  %v2658_v5 = vld [vmem:[%s4250_s18] ss:$0 sm:$0xff] (!%p2657_p9) }
 0x6bb   : > { %v1947_v11 = vmul.f32 %v4025_v9, %v4025_v9 }
 0x6bc   : > { %v1952_v12 = vsel %vm849_vm1, %v1948_v10, 0.0  ;;  %3156 = vmatprep.subr.bf16.mxu0 %v3155_v17  ;;  %v2172_v10 = vld [vmem:[%s3839_s7 + $0x70] sm:$0xff] }
 0x6bd   : > { %1953 = vadd.xlane.f32.xlu1 %v1952_v12  ;;  %v1949_v3 = vsel %vm849_vm1, %v1947_v11, 0.0  ;;  %3158 = vmatpush3.bf16.msra.mxu0 %v3155_v17  ;;  %v2173_v11 = vld [vmem:[%s3839_s7 + $0x78] sm:$0xff] }
 0x6be   : > { %1950 = vadd.xlane.f32.xlu0 %v1949_v3  ;;  %3160 = vmatprep.subr.bf16.mxu0 %v3159_v25  ;;  %v3199_v12 = vpack.c.bf16 %v2173_v11, %v2172_v10 }
 0x6c1   : > { %3162 = vmatpush3.bf16.msra.mxu0 %v3159_v25 }
 0x6c2   : > { %3164 = vmatprep.subr.bf16.mxu0 %v3163_v29 }
 0x6c5   : > { %3166 = vmatpush3.bf16.msra.mxu0 %v3163_v29 }
 0x6c6   : > { %3168 = vmatprep.subr.bf16.mxu0 %v3167_v35 }
 0x6c9   : > { %3170 = vmatpush3.bf16.msra.mxu0 %v3167_v35  ;;  %v2283_v35 = vld [vmem:[%s4249_s9 + $0x8] sm:$0xff] (!%p2657_p9) }
 0x74a   : > { %v1954_v36 = vpop.xlane.xlu1 %1953 }
 0x74b   : > { %v1956_v37 = vmul.f32 0.015625, %v1954_v36  ;;  %v1951_v38 = vpop.xlane.xlu0 %1950  ;;  %v2285_v36 = vld [vmem:[%s4249_s9 + $0x18] sm:$0xff] (!%p2657_p9) }
 0x74c   : > { %v1955_v39 = vmul.f32 0.015625, %v1951_v38  ;;  %v2282_v38 = vld [vmem:[%s4249_s9] sm:$0xff] (!%p2657_p9) }
 0x74d   : > { %v1958_v40 = vadd.f32 1e-05, %v1956_v37  ;;  %v3203_v37 = vpack.c.bf16 (!%p2657_p9), %v2285_v36, %v2283_v35 }
 0x74e   : > { %v1957_v41 = vadd.f32 1e-05, %v1955_v39  ;;  %v2284_v39 = vld [vmem:[%s4249_s9 + $0x10] sm:$0xff] (!%p2657_p9) }
 0x74f   : > { %3338 = vrsqrt.f32 %v1958_v40  ;;  %v3205_v40 = vpack.c.bf16 (!%p2657_p9), %v2284_v39, %v2282_v38  ;;  %3204 = vmatprep.subr.bf16.mxu0 (!%p2657_p9), %v3203_v37 }
 0x750   : > { %3340 = vrsqrt.f32 %v1957_v41  ;;  %v2287_v41 = vld [vmem:[%s4249_s9 + $0x28] sm:$0xff] (!%p2657_p9) }
 0x759   : > { %v3339_v42 = vpop.eup %3338 }
 0x75a   : > { %v3341_v43 = vpop.eup %3340  ;;  %v1962_v44 = vmul.f32 %v3339_v42, %v4022_v7  ;;  %v2289_v42 = vld [vmem:[%s4249_s9 + $0x38] sm:$0xff] (!%p2657_p9) }
 0x75b   : > { %v1961_v46 = vmul.f32 %v3341_v43, %v4025_v9  ;;  %v3207_v43 = vpack.c.bf16 (!%p2657_p9), %v2289_v42, %v2287_v41 }
 0x75c   : > { %v1971_v48 = vmul.f32 %v2652_v45, %v1962_v44  ;;  %v2286_v44 = vld [vmem:[%s4249_s9 + $0x20] sm:$0xff] (!%p2657_p9) }
 0x75d   : > { %v1970_v47 = vmul.f32 %v2652_v45, %v1961_v46  ;;  %v2288_v45 = vld [vmem:[%s4249_s9 + $0x30] sm:$0xff] (!%p2657_p9) }
 0x75e   : > { %v3209_v46 = vpack.c.bf16 (!%p2657_p9), %v2288_v45, %v2286_v44 }
 0x75f   : > { %2966 = vmatprep.mubr.msk.f32.mxu1 %vm849_vm1, %v1970_v47  ;;  %2985 = vmatprep.mubr.msk.f32.mxu0 %vm849_vm1, %v1970_v47  ;;  %v2291_v47 = vld [vmem:[%s4249_s9 + $0x48] sm:$0xff] (!%p2657_p9) }
 0x760   : > { %2967 = vmatmul.mubr.msk.f32.vlgmr.msra.gmra.mrb[12].mxu1 %vm849_vm1, %v1971_v48  ;;  %2986 = vmatmul.mubr.msk.f32.vlgmr.msra.gmra.mrb[16].mxu0 %vm849_vm1, %v1971_v48  ;;  %v2293_v48 = vld [vmem:[%s4249_s9 + $0x58] sm:$0xff] (!%p2657_p9) }
 0x761   : > { %3174 = vmatpush3.bf16.msra.mxu1 %v3171_v51  ;;  %3206 = vmatpush1.bf16.msra.mxu0 (!%p2657_p9), %v3205_v40  ;;  %v3211_v49 = vpack.c.bf16 (!%p2657_p9), %v2293_v48, %v2291_v47  ;;  %v2292_v51 = vld [vmem:[%s4249_s9 + $0x50] sm:$0xff] (!%p2657_p9) }
 0x762   : > { %3176 = vmatprep.subr.bf16.mxu1 %v3175_v54  ;;  %3208 = vmatprep.subr.bf16.mxu0 (!%p2657_p9), %v3207_v43  ;;  %v3213_v52 = vpack.c.bf16 (!%p2657_p9), %v2292_v51, %v2290_v50 }
 0x763   : > { %2368 = vmatprep.mubr.f32.mxu0 (!%p2657_p9), %v3527_v59 }
 0x765   : > { %3178 = vmatpush3.bf16.msra.mxu1 %v3175_v54  ;;  %3210 = vmatpush1.bf16.msra.mxu0 (!%p2657_p9), %v3209_v46  ;;  %v2297_v54 = vld [vmem:[%s4249_s9 + $0x78] sm:$0xff] (!%p2657_p9) }
 0x766   : > { %3180 = vmatprep.subr.bf16.mxu1 %v3179_v57  ;;  %3212 = vmatprep.subr.bf16.mxu0 (!%p2657_p9), %v3211_v49  ;;  %v3215_v55 = vpack.c.bf16 (!%p2657_p9), %v2297_v54, %v2295_v53 }
 0x769   : > { %3182 = vmatpush3.bf16.msra.mxu1 %v3179_v57  ;;  %3214 = vmatpush1.bf16.msra.mxu0 (!%p2657_p9), %v3213_v52  ;;  %v2296_v57 = vld [vmem:[%s4249_s9 + $0x70] sm:$0xff] (!%p2657_p9) }
 0x76a   : > { %3184 = vmatprep.subr.bf16.mxu1 %v3183_v60  ;;  %v3217_v58 = vpack.c.bf16 (!%p2657_p9), %v2296_v57, %v2294_v56  ;;  %3216 = vmatprep.subr.bf16.mxu0 (!%p2657_p9), %v3215_v55 }
 0x76d   : > { %3186 = vmatpush3.bf16.msra.mxu1 %v3183_v60  ;;  %3218 = vmatpush1.bf16.msra.mxu0 (!%p2657_p9), %v3217_v58 }
 0x76e   : > { %3188 = vmatprep.subr.bf16.mxu1 %v3187_v63 }
 0x771   : > { %3190 = vmatpush3.bf16.msra.mxu1 %v3187_v63 }
 0x772   : > { %3192 = vmatprep.subr.bf16.mxu1 %v3191_v4 }
 0x775   : > { %3194 = vmatpush3.bf16.msra.mxu1 %v3191_v4 }
 0x776   : > { %3196 = vmatprep.subr.bf16.mxu1 %v3195_v8 }
 0x779   : > { %3198 = vmatpush3.bf16.msra.mxu1 %v3195_v8 }
 0x77a   : > { %3200 = vmatprep.subr.bf16.mxu1 %v3199_v12 }
 0x77d   : > { %3202 = vmatpush3.bf16.msra.mxu1 %v3199_v12 }
 0x77e   : > { %3219 = vmatprep.subr.bf16.mxu1 (!%p2657_p9), %v3203_v37 }
 0x833   : > { %v2968_v3 = vpop.f32.mrb[12].mxu1  ;;  %v2987_v13 = vpop.f32.mrb[16].mxu0 }
 0x834   : > { %v2145_v14 = vsub.f32 0.0, %v2968_v3  ;;  %v2052_v2 = vpop.f32.mrb[13].mxu1  ;;  %v2135_v15 = vpop.f32.mrb[17].mxu0 }
 0x835   : > { %v2144_v16 = vsub.f32 0.0, %v2052_v2 }
 0x836   : > { %v2148_v17 = vmul.f32 1.442695, %v2145_v14 }
 0x837   : > { %v2146_v18 = vmul.f32 1.442695, %v2144_v16 }
 0x838   : > { %3342 = vpow2.f32 %v2148_v17 }
 0x839   : > { %3344 = vpow2.f32 %v2146_v18 }
 0x842   : > { %v3343_v19 = vpop.eup %3342 }
 0x843   : > { %v3345_v20 = vpop.eup %3344  ;;  %v2151_v21 = vadd.f32 1.0, %v3343_v19 }
 0x844   : > { %v2150_v22 = vadd.f32 1.0, %v3345_v20 }
 0x845   : > { %3346 = vrcp.f32 %v2151_v21 }
 0x846   : > { %3348 = vrcp.f32 %v2150_v22 }
 0x84f   : > { %v3347_v23 = vpop.eup %3346 }
 0x850   : > { %v3349_v24 = vpop.eup %3348  ;;  %v2155_v25 = vmul.f32 %v3347_v23, %v2968_v3 }
 0x851   : > { %v2154_v26 = vmul.f32 %v3349_v24, %v2052_v2 }
 0x852   : > { %v2157_v27 = vmul.f32 %v2987_v13, %v2155_v25 }
 0x853   : > { %v2156_v28 = vmul.f32 %v2154_v26, %v2135_v15 }
 0x855   : > { %3020 = vmatprep.mubr.f32.mxu1 %v2156_v28 }
 0x856   : > { %3021 = vmatmul.mubr.f32.vlgmr.msra.gmra.mrb[14].mxu1 %v2157_v27 }
 0x857   : > { %3223 = vmatpush1.bf16.msra.mxu1 (!%p2657_p9), %v3205_v40  ;;  %2374 = vmatprep.mubr.f32.mxu1 (!%p2657_p9), %v3527_v59 }
 0x858   : > { %3220 = vmatprep.subr.bf16.mxu1 (!%p2657_p9), %v3207_v43 }
 0x85b   : > { %3224 = vmatpush1.bf16.msra.mxu1 (!%p2657_p9), %v3209_v46 }
 0x85c   : > { %3221 = vmatprep.subr.bf16.mxu1 (!%p2657_p9), %v3211_v49 }
 0x85f   : > { %3225 = vmatpush1.bf16.msra.mxu1 (!%p2657_p9), %v3213_v52 }
 0x860   : > { %3222 = vmatprep.subr.bf16.mxu1 (!%p2657_p9), %v3215_v55 }
 0x863   : > { %3226 = vmatpush1.bf16.msra.mxu1 (!%p2657_p9), %v3217_v58 }
 0x927   : > { %2256 = sbr.rel (%p2657_p9) target bundleno = 2731 (0xaab), region = 120 }
 0x929   : > { %v3022_v29 = vpop.f32.mrb[14].mxu1 }
 0x92a   : > { %v4077_v30 = vadd.f32 %v3022_v29, %v4022_v7  ;;  %v2240_v31 = vpop.f32.mrb[15].mxu1 }
 0x92b   : > { %v4080_v32 = vadd.f32 %v2240_v31, %v4025_v9 }
 0x92c   : > { %2252 = vst.msk [vmem:[#allocation2 + $0x8] sm:$0xff] %vm849_vm1, %v4077_v30  ;;  %v2258_v7 = vmul.f32 (!%p2657_p9), %v4077_v30, %v4077_v30 }
 0x92d   : > { %2251 = vst.msk [vmem:[#allocation2] sm:$0xff] %vm849_vm1, %v4080_v32  ;;  %v2257_v33 = vmul.f32 (!%p2657_p9), %v4080_v32, %v4080_v32 }
 0x92e   : > { %v2262_v9 = vsel %vm849_vm1, %v2258_v7, 0.0 }
 0x92f   : > { %v2259_v34 = vsel %vm849_vm1, %v2257_v33, 0.0 }
 0x930   : > { %2260 = vadd.xlane.f32.xlu0 %v2259_v34 }
 0x934   : > { %2263 = vadd.xlane.f32.xlu0 %v2262_v9 }
 0x9bd   : > { %v2261_v60 = vpop.xlane.xlu0 %2260 }
 0x9be   : > { %v2265_v61 = vmul.f32 0.015625, %v2261_v60 }
 0x9c0   : > { %v2267_v62 = vadd.f32 1e-05, %v2265_v61 }
 0x9c1   : > { %v2264_v63 = vpop.xlane.xlu0 %2263 }
 0x9c2   : > { %3350 = vrsqrt.f32 %v2267_v62  ;;  %v2266_v0 = vmul.f32 0.015625, %v2264_v63 }
 0x9c4   : > { %v2268_v1 = vadd.f32 1e-05, %v2266_v0 }
 0x9c6   : > { %3352 = vrsqrt.f32 %v2268_v1 }
 0x9cc   : > { %v3351_v4 = vpop.eup %3350 }
 0x9cd   : > { %v2271_v6 = vmul.f32 %v3351_v4, %v4080_v32 }
 0x9cf   : > { %v2280_v8 = vmul.f32 %v2658_v5, %v2271_v6 }
 0x9d0   : > { %v3353_v10 = vpop.eup %3352 }
 0x9d1   : > { %v2272_v11 = vmul.f32 %v3353_v10, %v4077_v30  ;;  %2659 = vmatmul.mubr.msk.f32.vlgmr.msra.gmra.mrb[0].mxu0 %vm849_vm1, %v2280_v8 }
 0x9d3   : > { %v2281_v12 = vmul.f32 %v2658_v5, %v2272_v11 }
 0x9d5   : > { %2660 = vmatmul.mubr.msk.f32.vlgmr.msra.gmra.mrb[0].mxu1 %vm849_vm1, %v2281_v12 }
 0xaa4   : > { %v2370_v3 = vpop.f32.mrb[0].mxu0 }
 0xaa5   : > { %2381 = vst [vmem:[#allocation11] sm:$0xff] %v2370_v3  ;;  %v2372_v13 = vpop.f32.mrb[1].mxu0 }
 0xaa6   : > { %2382 = vst [vmem:[#allocation11 + $0x8] sm:$0xff] %v2372_v13 }
 0xaa8   : > { %v2376_v14 = vpop.f32.mrb[0].mxu1 }
 0xaa9   : > { %2383 = vst [vmem:[#allocation11 + $0x10] sm:$0xff] %v2376_v14  ;;  %v2378_v2 = vpop.f32.mrb[1].mxu1 }
 0xaaa   : > { %2384 = vst [vmem:[#allocation11 + $0x18] sm:$0xff] %v2378_v2 }
 0xaab PF: > { %p3268_p2 = scmp.eq.s32.totalorder %s3636_s30, 1  ;;  %s3528_s2 = smov [#allocation11]  }
 0xaac   : > { %s2391_s20 = sshll.u32 %s3528_s2, 4  ;;  %s2392_s20 = int_to_ptr.vmem [resolvable:$true] %s2391_s20 }
 0xaad   : > { %s3466_s0 = scalar_lea.vmem %s2392_s20, 512  ;;  %p3473_p13 = scmp.lt.s32.totalorder %s2392_s20, %s2392_s20 }
 0xaae   : > { %p3467_p10 = scmp.ne.s32.totalorder %s2392_s20, %s3466_s0  ;;  %p3474_p8 = scmp.lt.s32.totalorder %s3466_s0, %s3466_s0 }
 0xab0   : > { %p3468_p11 = pnand %p3467_p10, %p3268_p2  ;;  %p3475_p0 = por %p3474_p8, %p3473_p13 }
 0xab2   : > { %p3469_p12 = pneg %p3468_p11 }
 0xab4   : > { %p3476_p3 = pnand %p3475_p0, %p3469_p12 }
 0xab6   : > { %3479 = shalt.err (!%p3476_p3)
}
 0xab7   : > { %s4251_s10 = sld [smem:[#allocation31_spill]] }
 0xabd   : > { %s3480_s11 = scalar_lea.hbm %s4251_s10, 512 }
 0xabe   : > { %p3481_p4 = scmp.ne.s32.totalorder %s4251_s10, %s3480_s11  ;;  %p3486_p5 = scmp.lt.u32.totalorder %s3480_s11, %s4251_s10 }
 0xac0   : > { %p3482_p1 = pnand %p3481_p4, %p3268_p2 }
 0xac2   : > { %p3483_p6 = pneg %p3482_p1 }
 0xac4   : > { %p3488_p7 = pnand %p3486_p5, %p3483_p6 }
 0xac6   : > { %3491 = shalt.err (!%p3488_p7)
}
 0xac7   : > { %s3529_s5 = smov 256  }
 0xac8   : > { %3244 = dma.vmem_to_hbm [thread:$0]  (%p3268_p2), %s2392_s20, 512, %s4251_s10, [#allocation5], %s3529_s5, %s3529_s5, %s3524_s22  }
 0xac9   : > { %3509 = dma.done.wait (%p3268_p2), [#allocation5], 512  }
 0xaca   : > { %3511 = vsyncadd (%p3268_p2), [#allocation5], 4294966784 }
 0xacb PF: > { %s4252_s23 = sld [smem:[#allocation16_spill]] }
 0xad1   : > { %s33_s0 = sadd.s32 1, %s4252_s23  }
 0xad2   : > { %p30_p9 = scmp.ge.s32.totalorder %s33_s0, 4  }
 0xad4   :  { %32 = sbr.rel (!%p30_p9) target bundleno = 20 (0x14), region = 178 }
 0xadb   :  { %2407 = vsyncpa [#allocation4], 1 }
 0xadc   :  { %2409 = vsyncpa [#allocation4 + $0x1], 1 }
 0xadd   :  { %2410 = vsyncpa [#allocation7], 1 }
 0xade   :  { %2411 = vsyncpa [#allocation10], 1 }
 0xadf   :  { %2412 = vsyncpa [#allocation5], 1 }
 0xae0   :  { %2414 = vsyncpa [#allocation5 + $0x1], 1 }

</bundles_post_ra>
